<compile_context>
chip_gen: v5e
topology: v5e:2x2
jax: 0.10.0
libtpu: 0.0.40
codegen_flags: <defaults>
</compile_context>

<pallas_src>
import jax
import jax.numpy as jnp
from jax.experimental import pallas as pl
from jax.experimental.pallas import tpu as pltpu


# ----------------------------------------------------------------------------
# Kernels
# ----------------------------------------------------------------------------

def _make_layer1_kernel(h1p, outp):
    """Fused layer-1 aggregation (+bias, ReLU) with the layer-1 feature
    transform computed in-kernel and the layer-2 feature transform fused
    into the epilogue.

    Per (row tile i, reduction tile k):
      xw            = X[k] @ [W0 | W1]           (wcat is VMEM-resident)
      acc[:, :h1p] += A1[i,k] @ xw[:, :h1p]
      acc[:, h1p:] += A2[i,k] @ xw[:, h1p:]
    On the last k:
      H = relu(acc + [b0 | b1]);   P = [ H1 @ W2 | H2 @ W3 ]
    """
    def kernel(a1_ref, a2_ref, x_ref, wcat_ref, bcat_ref, w2_ref, w3_ref,
               p_ref, acc_ref):
        k = pl.program_id(1)

        @pl.when(k == 0)
        def _init():
            acc_ref[...] = jnp.zeros_like(acc_ref)

        # Layer-1 feature transform for this k panel (small-K, cheap in this
        # memory-bound kernel).  Cast to the streaming dtype so both MXU
        # operands of the big dots match (native bf16 path).
        xw = jnp.dot(x_ref[...], wcat_ref[...],
                     preferred_element_type=jnp.float32).astype(a1_ref.dtype)
        acc_ref[:, :h1p] += jnp.dot(a1_ref[...], xw[:, :h1p],
                                    preferred_element_type=jnp.float32)
        acc_ref[:, h1p:] += jnp.dot(a2_ref[...], xw[:, h1p:],
                                    preferred_element_type=jnp.float32)

        @pl.when(k == pl.num_programs(1) - 1)
        def _finalize():
            h = jnp.maximum(acc_ref[...] + bcat_ref[...], 0.0)
            h = h.astype(w2_ref.dtype)          # native-dtype MXU epilogue
            p1 = jnp.dot(h[:, :h1p], w2_ref[...],
                         preferred_element_type=jnp.float32)
            p2 = jnp.dot(h[:, h1p:], w3_ref[...],
                         preferred_element_type=jnp.float32)
            p_ref[:, :outp] = p1.astype(p_ref.dtype)
            p_ref[:, outp:] = p2.astype(p_ref.dtype)

    return kernel


def _make_layer2_kernel(outp):
    """Fused layer-2 aggregation + sum + bias:
      out = A1 @ P[:, :outp] + A2 @ P[:, outp:] + (b2 + b3)
    """
    def kernel(a1_ref, a2_ref, p_ref, b_ref, o_ref, acc_ref):
        k = pl.program_id(1)

        @pl.when(k == 0)
        def _init():
            acc_ref[...] = jnp.zeros_like(acc_ref)

        p = p_ref[...]
        acc_ref[...] += (
            jnp.dot(a1_ref[...], p[:, :outp],
                    preferred_element_type=jnp.float32)
            + jnp.dot(a2_ref[...], p[:, outp:],
                      preferred_element_type=jnp.float32))

        @pl.when(k == pl.num_programs(1) - 1)
        def _finalize():
            o_ref[...] = acc_ref[...] + b_ref[...]

    return kernel


# ----------------------------------------------------------------------------
# Glue: normalized dense adjacency, params, padding helpers
# ----------------------------------------------------------------------------

def gcn_norm_dense(edge_index, num_nodes):
    """Dense normalized adjacency matching PyG gcn_norm (add_self_loops=True,
    edge_weight=1, symmetric normalization). Ahat[dst, src] layout."""
    src, dst = edge_index[0], edge_index[1]
    loop = jnp.arange(num_nodes, dtype=edge_index.dtype)
    src = jnp.concatenate([src, loop])
    dst = jnp.concatenate([dst, loop])
    a = jnp.zeros((num_nodes, num_nodes), jnp.float32).at[dst, src].add(1.0)
    deg = a.sum(axis=1)
    dinv = jnp.where(deg > 0.0, jax.lax.rsqrt(deg), 0.0)
    return dinv[:, None] * a * dinv[None, :]


def init_params(key, in_channels, hidden1, hidden2, out_channels):
    """Glorot-uniform weights (like PyG GCNConv), zero biases."""
    ks = jax.random.split(key, 4)

    def glorot(k, fan_in, fan_out):
        limit = jnp.sqrt(6.0 / (fan_in + fan_out))
        return jax.random.uniform(k, (fan_in, fan_out), jnp.float32,
                                  minval=-limit, maxval=limit)

    w0 = glorot(ks[0], in_channels, hidden1)
    w1 = glorot(ks[1], in_channels, hidden2)
    w2 = glorot(ks[2], hidden1, out_channels)
    w3 = glorot(ks[3], hidden2, out_channels)
    b0 = jnp.zeros((1, hidden1), jnp.float32)
    b1 = jnp.zeros((1, hidden2), jnp.float32)
    b2 = jnp.zeros((1, out_channels), jnp.float32)
    b3 = jnp.zeros((1, out_channels), jnp.float32)
    return (w0, b0, w1, b1, w2, b2, w3, b3)


def _round_up(x, m):
    return ((x + m - 1) // m) * m


def _pad2(a, rows, cols):
    return jnp.pad(a, ((0, rows - a.shape[0]), (0, cols - a.shape[1])))


# ----------------------------------------------------------------------------
# Forward
# ----------------------------------------------------------------------------

def gcn_ensemble_forward(node_feature, edge_index, edge_index_new, params,
                         *, a_dtype=jnp.bfloat16):
    """Forward pass of GCN_ensemble.

    a_dtype: dtype of the streamed N^2 adjacencies, the X/P activation panels
    and W2/W3 (bf16 by default — halves the dominant HBM traffic on every
    generation; accumulation is always f32).  Pass jnp.float32 for exact math.
    """
    n, in_c = node_feature.shape
    w0, b0, w1, b1, w2, b2, w3, b3 = params
    h1c, h2c, out_c = w0.shape[1], w1.shape[1], w2.shape[1]

    # --- padded / tiled geometry -------------------------------------------
    # npad decoupled from tk: keep padding waste <= 255 rows/cols, then pick
    # the largest k-tile that divides npad and the largest 256-multiple row
    # tile that keeps grid_rows even (v7x 2-TC load balance).
    npad = max(256, _round_up(n, 256))
    tk = max(c for c in (256, 512, 1024) if npad % c == 0)
    tm = 512 if npad % 1024 == 0 else 256
    cp = _round_up(in_c, 128)
    h1p = _round_up(h1c, 128)
    h2p = _round_up(h2c, 128)
    outp = _round_up(out_c, 128)
    htot = h1p + h2p

    # --- normalized dense adjacencies (plain-JAX glue), zero padded ---------
    a1 = jnp.pad(gcn_norm_dense(edge_index, n),
                 ((0, npad - n), (0, npad - n))).astype(a_dtype)
    a2 = jnp.pad(gcn_norm_dense(edge_index_new, n),
                 ((0, npad - n), (0, npad - n))).astype(a_dtype)

    xp = _pad2(node_feature.astype(jnp.float32), npad, cp).astype(a_dtype)
    wcat = jnp.concatenate([_pad2(w0, cp, h1p), _pad2(w1, cp, h2p)],
                           axis=1).astype(a_dtype)
    bcat = jnp.concatenate([_pad2(b0, 1, h1p), _pad2(b1, 1, h2p)], axis=1)
    w2p = _pad2(w2, h1p, outp).astype(a_dtype)
    w3p = _pad2(w3, h2p, outp).astype(a_dtype)
    b23 = _pad2(b2 + b3, 1, outp)

    grid_rows = npad // tm
    grid_cols = npad // tk
    ab = jnp.dtype(a_dtype).itemsize

    # Raise scoped-VMEM limit: v5e defaults to 16 MiB which doesn't fit the
    # enlarged double-buffered f32 tiles; 48 MiB stays under v7x's 64 MiB
    # physical VMEM per TensorCore.
    cparams = pltpu.CompilerParams(
        dimension_semantics=("parallel", "arbitrary"),
        vmem_limit_bytes=48 * 1024 * 1024)

    # --- Kernel 1: fused layer-1 (aggregation + ReLU) with in-kernel XW and
    #     the layer-2 feature transform in the epilogue ------------------------
    #   P = [ relu(A1 @ (X @ W0) + b0) @ W2  |  relu(A2 @ (X @ W1) + b1) @ W3 ]
    cost1 = pl.CostEstimate(
        flops=int(2 * npad * npad * htot            # two accumulating dots
                  + 2 * grid_rows * npad * cp * htot  # in-kernel XW recompute
                  + 2 * npad * htot * outp),          # epilogue transforms
        transcendentals=0,
        bytes_accessed=int(2 * npad * npad * ab          # A1 + A2
                           + grid_rows * npad * cp * ab  # X re-reads
                           + npad * 2 * outp * ab        # P write
                           + (cp * htot + h1p * outp + h2p * outp) * ab
                           + htot * 4))
    p = pl.pallas_call(
        _make_layer1_kernel(h1p, outp),
        out_shape=jax.ShapeDtypeStruct((npad, 2 * outp), a_dtype),
        grid_spec=pltpu.PrefetchScalarGridSpec(
            num_scalar_prefetch=0,
            grid=(grid_rows, grid_cols),
            in_specs=[
                pl.BlockSpec((tm, tk), lambda i, k: (i, k)),      # A1 panel
                pl.BlockSpec((tm, tk), lambda i, k: (i, k)),      # A2 panel
                pl.BlockSpec((tk, cp), lambda i, k: (k, 0)),      # X panel
                pl.BlockSpec((cp, htot), lambda i, k: (0, 0)),    # [W0 | W1]
                pl.BlockSpec((1, htot), lambda i, k: (0, 0)),     # [b0 | b1]
                pl.BlockSpec((h1p, outp), lambda i, k: (0, 0)),   # W2
                pl.BlockSpec((h2p, outp), lambda i, k: (0, 0)),   # W3
            ],
            out_specs=pl.BlockSpec((tm, 2 * outp), lambda i, k: (i, 0)),
            scratch_shapes=[pltpu.VMEM((tm, htot), jnp.float32)]),
        compiler_params=cparams,
        cost_estimate=cost1,
    )(a1, a2, xp, wcat, bcat, w2p, w3p)

    # --- Kernel 2: fused layer-2 aggregation + sum + bias --------------------
    #   out = A1 @ P1 + A2 @ P2 + (b2 + b3)
    cost2 = pl.CostEstimate(
        flops=int(4 * npad * npad * outp),
        transcendentals=0,
        bytes_accessed=int(2 * npad * npad * ab
                           + grid_rows * npad * 2 * outp * ab
                           + npad * outp * 4
                           + outp * 4))
    out = pl.pallas_call(
        _make_layer2_kernel(outp),
        out_shape=jax.ShapeDtypeStruct((npad, outp), jnp.float32),
        grid_spec=pltpu.PrefetchScalarGridSpec(
            num_scalar_prefetch=0,
            grid=(grid_rows, grid_cols),
            in_specs=[
                pl.BlockSpec((tm, tk), lambda i, k: (i, k)),        # A1 panel
                pl.BlockSpec((tm, tk), lambda i, k: (i, k)),        # A2 panel
                pl.BlockSpec((tk, 2 * outp), lambda i, k: (k, 0)),  # P panel
                pl.BlockSpec((1, outp), lambda i, k: (0, 0)),       # b2 + b3
            ],
            out_specs=pl.BlockSpec((tm, outp), lambda i, k: (i, 0)),
            scratch_shapes=[pltpu.VMEM((tm, outp), jnp.float32)]),
        compiler_params=cparams,
        cost_estimate=cost2,
    )(a1, a2, p, b23)

    return out[:n, :out_c]


def _reference(node_feature, edge_index, edge_index_new, params):
    """Pure-JAX reference of the same forward pass."""
    n = node_feature.shape[0]
    a1 = gcn_norm_dense(edge_index, n)
    a2 = gcn_norm_dense(edge_index_new, n)
    w0, b0, w1, b1, w2, b2, w3, b3 = params
    h1 = jnp.maximum(a1 @ (node_feature @ w0) + b0, 0.0)
    h2 = jnp.maximum(a2 @ (node_feature @ w1) + b1, 0.0)
    return (a1 @ (h1 @ w2) + b2) + (a2 @ (h2 @ w3) + b3)


if __name__ == "__main__":
    N = 16           # nodes
    IN_C = 8         # in_channels
    H1 = 16          # hidden_channels1
    H2 = 16          # hidden_channels2
    OUT_C = 8        # out_channels
    E = 32           # edges per graph view

    key = jax.random.PRNGKey(0)
    k_x, k_e1, k_e2, k_p = jax.random.split(key, 4)

    node_feature = jax.random.normal(k_x, (N, IN_C), jnp.float32)
    edge_index = jax.random.randint(k_e1, (2, E), 0, N, dtype=jnp.int32)
    edge_index_new = jax.random.randint(k_e2, (2, E), 0, N, dtype=jnp.int32)
    params = init_params(k_p, IN_C, H1, H2, OUT_C)

    ref = _reference(node_feature, edge_index, edge_index_new, params)

    # Default path: bf16 streaming operands, f32 accumulation (recommended on
    # every generation — kernels are HBM-bound).  Looser tolerance.
    out = gcn_ensemble_forward(node_feature, edge_index, edge_index_new, params)
    out = jax.block_until_ready(out)
    assert out.shape == (N, OUT_C)
    assert jnp.allclose(out, ref, atol=8e-2, rtol=8e-2)

    # Exact f32 path (tight tolerance vs. reference).
    out_f32 = gcn_ensemble_forward(node_feature, edge_index, edge_index_new,
                                   params, a_dtype=jnp.float32)
    out_f32 = jax.block_until_ready(out_f32)
    assert jnp.allclose(out_f32, ref, atol=1e-4, rtol=1e-4)

    print("KERNEL_OK")
</pallas_src>

<mosaic_0001>
module attributes {stable_mosaic.version = 11 : i64} {
  func.func @kernel(%arg0: i32, %arg1: i32, %arg2: memref<256x256xbf16, #tpu.memory_space<vmem>>, %arg3: memref<256x256xbf16, #tpu.memory_space<vmem>>, %arg4: memref<256x128xbf16, #tpu.memory_space<vmem>>, %arg5: memref<128x256xbf16, #tpu.memory_space<vmem>>, %arg6: memref<1x256xf32, #tpu.memory_space<vmem>>, %arg7: memref<128x128xbf16, #tpu.memory_space<vmem>>, %arg8: memref<128x128xbf16, #tpu.memory_space<vmem>>, %arg9: memref<256x256xbf16, #tpu.memory_space<vmem>>, %arg10: memref<256x256xf32, #tpu.memory_space<vmem>>) attributes {dimension_semantics = [#tpu.dimension_semantics<parallel>, #tpu.dimension_semantics<arbitrary>], iteration_bounds = array<i64: 1, 1>, scalar_prefetch = 0 : i64, scratch_operands = 1 : i64, tpu.core_type = #tpu.core_type<tc>, window_params = [{transform_indices = @transform_0, window_bounds = array<i64: 256, 256>}, {transform_indices = @transform_1, window_bounds = array<i64: 256, 256>}, {transform_indices = @transform_2, window_bounds = array<i64: 256, 128>}, {pipeline_mode = #tpu.pipeline_mode<synchronous>, transform_indices = @transform_3, window_bounds = array<i64: 128, 256>}, {pipeline_mode = #tpu.pipeline_mode<synchronous>, transform_indices = @transform_4, window_bounds = array<i64: 1, 256>}, {pipeline_mode = #tpu.pipeline_mode<synchronous>, transform_indices = @transform_5, window_bounds = array<i64: 128, 128>}, {pipeline_mode = #tpu.pipeline_mode<synchronous>, transform_indices = @transform_6, window_bounds = array<i64: 128, 128>}, {transform_indices = @transform_7, window_bounds = array<i64: 256, 256>}]} {
    %c0_i32 = arith.constant 0 : i32
    %0 = arith.cmpi eq, %arg1, %c0_i32 : i32
    %1 = arith.extui %0 : i1 to i32
    %c0_i32_0 = arith.constant 0 : i32
    %2 = arith.cmpi ne, %1, %c0_i32_0 : i32
    scf.if %2 {
      %cst_19 = arith.constant 0.000000e+00 : f32
      %22 = vector.broadcast %cst_19 : f32 to vector<256x256xf32>
      %c0_20 = arith.constant 0 : index
      %c0_21 = arith.constant 0 : index
      %23 = vector.load %arg10[%c0_20, %c0_21] : memref<256x256xf32, #tpu.memory_space<vmem>>, vector<256x256xf32>
      tpu.vector_store %arg10[%c0_20, %c0_21], %22 {strides = array<i32>} : memref<256x256xf32, #tpu.memory_space<vmem>>, vector<256x256xf32>,
    } else {
    }
    %c0 = arith.constant 0 : index
    %c0_1 = arith.constant 0 : index
    %3 = vector.load %arg4[%c0, %c0_1] : memref<256x128xbf16, #tpu.memory_space<vmem>>, vector<256x128xbf16>
    %c0_2 = arith.constant 0 : index
    %c0_3 = arith.constant 0 : index
    %4 = vector.load %arg5[%c0_2, %c0_3] : memref<128x256xbf16, #tpu.memory_space<vmem>>, vector<128x256xbf16>
    %cst = arith.constant dense<0.000000e+00> : vector<256x256xf32>
    %5 = tpu.matmul %3, %4, %cst {dimension_numbers = #tpu.dot_dimension_numbers<[1], [0], [0], [1], [0, 0, 1, 1], [], []>} : vector<256x128xbf16>, vector<128x256xbf16>, vector<256x256xf32> -> vector<256x256xf32>
    %6 = arith.truncf %5 : vector<256x256xf32> to vector<256x256xbf16>
    %c0_4 = arith.constant 0 : index
    %c0_5 = arith.constant 0 : index
    %7 = vector.load %arg10[%c0_4, %c0_5] : memref<256x256xf32, #tpu.memory_space<vmem>>, vector<256x128xf32>
    %c0_6 = arith.constant 0 : index
    %c0_7 = arith.constant 0 : index
    %8 = vector.load %arg2[%c0_6, %c0_7] : memref<256x256xbf16, #tpu.memory_space<vmem>>, vector<256x256xbf16>
    %9 = vector.extract_strided_slice %6 {offsets = [0, 0], sizes = [256, 128], strides = [1, 1]} : vector<256x256xbf16> to vector<256x128xbf16>
    %cst_8 = arith.constant dense<0.000000e+00> : vector<256x128xf32>
    %10 = tpu.matmul %8, %9, %cst_8 {dimension_numbers = #tpu.dot_dimension_numbers<[1], [0], [0], [1], [0, 0, 1, 1], [], []>} : vector<256x256xbf16>, vector<256x128xbf16>, vector<256x128xf32> -> vector<256x128xf32>
    %11 = arith.addf %7, %10 : vector<256x128xf32>
    %c0_9 = arith.constant 0 : index
    %c0_10 = arith.constant 0 : index
    %12 = vector.load %arg10[%c0_9, %c0_10] : memref<256x256xf32, #tpu.memory_space<vmem>>, vector<256x128xf32>
    tpu.vector_store %arg10[%c0_9, %c0_10], %11 {strides = array<i32>} : memref<256x256xf32, #tpu.memory_space<vmem>>, vector<256x128xf32>,
    %c0_11 = arith.constant 0 : index
    %c128 = arith.constant 128 : index
    %13 = vector.load %arg10[%c0_11, %c128] : memref<256x256xf32, #tpu.memory_space<vmem>>, vector<256x128xf32>
    %c0_12 = arith.constant 0 : index
    %c0_13 = arith.constant 0 : index
    %14 = vector.load %arg3[%c0_12, %c0_13] : memref<256x256xbf16, #tpu.memory_space<vmem>>, vector<256x256xbf16>
    %15 = vector.extract_strided_slice %6 {offsets = [0, 128], sizes = [256, 128], strides = [1, 1]} : vector<256x256xbf16> to vector<256x128xbf16>
    %cst_14 = arith.constant dense<0.000000e+00> : vector<256x128xf32>
    %16 = tpu.matmul %14, %15, %cst_14 {dimension_numbers = #tpu.dot_dimension_numbers<[1], [0], [0], [1], [0, 0, 1, 1], [], []>} : vector<256x256xbf16>, vector<256x128xbf16>, vector<256x128xf32> -> vector<256x128xf32>
    %17 = arith.addf %13, %16 : vector<256x128xf32>
    %c0_15 = arith.constant 0 : index
    %c128_16 = arith.constant 128 : index
    %18 = vector.load %arg10[%c0_15, %c128_16] : memref<256x256xf32, #tpu.memory_space<vmem>>, vector<256x128xf32>
    tpu.vector_store %arg10[%c0_15, %c128_16], %17 {strides = array<i32>} : memref<256x256xf32, #tpu.memory_space<vmem>>, vector<256x128xf32>,
    %c0_i32_17 = arith.constant 0 : i32
    %19 = arith.cmpi eq, %arg1, %c0_i32_17 : i32
    %20 = arith.extui %19 : i1 to i32
    %c0_i32_18 = arith.constant 0 : i32
    %21 = arith.cmpi ne, %20, %c0_i32_18 : i32
    scf.if %21 {
      %c0_19 = arith.constant 0 : index
      %c0_20 = arith.constant 0 : index
      %22 = vector.load %arg10[%c0_19, %c0_20] : memref<256x256xf32, #tpu.memory_space<vmem>>, vector<256x256xf32>
      %c0_21 = arith.constant 0 : index
      %c0_22 = arith.constant 0 : index
      %23 = vector.load %arg6[%c0_21, %c0_22] : memref<1x256xf32, #tpu.memory_space<vmem>>, vector<1x256xf32>
      %24 = vector.broadcast %23 : vector<1x256xf32> to vector<256x256xf32>
      %25 = arith.addf %22, %24 : vector<256x256xf32>
      %cst_23 = arith.constant 0.000000e+00 : f32
      %26 = vector.broadcast %cst_23 : f32 to vector<256x256xf32>
      %27 = arith.maximumf %25, %26 : vector<256x256xf32>
      %28 = arith.truncf %27 : vector<256x256xf32> to vector<256x256xbf16>
      %29 = vector.extract_strided_slice %28 {offsets = [0, 0], sizes = [256, 128], strides = [1, 1]} : vector<256x256xbf16> to vector<256x128xbf16>
      %c0_24 = arith.constant 0 : index
      %c0_25 = arith.constant 0 : index
      %30 = vector.load %arg7[%c0_24, %c0_25] : memref<128x128xbf16, #tpu.memory_space<vmem>>, vector<128x128xbf16>
      %cst_26 = arith.constant dense<0.000000e+00> : vector<256x128xf32>
      %31 = tpu.matmul %29, %30, %cst_26 {dimension_numbers = #tpu.dot_dimension_numbers<[1], [0], [0], [1], [0, 0, 1, 1], [], []>} : vector<256x128xbf16>, vector<128x128xbf16>, vector<256x128xf32> -> vector<256x128xf32>
      %32 = vector.extract_strided_slice %28 {offsets = [0, 128], sizes = [256, 128], strides = [1, 1]} : vector<256x256xbf16> to vector<256x128xbf16>
      %c0_27 = arith.constant 0 : index
      %c0_28 = arith.constant 0 : index
      %33 = vector.load %arg8[%c0_27, %c0_28] : memref<128x128xbf16, #tpu.memory_space<vmem>>, vector<128x128xbf16>
      %cst_29 = arith.constant dense<0.000000e+00> : vector<256x128xf32>
      %34 = tpu.matmul %32, %33, %cst_29 {dimension_numbers = #tpu.dot_dimension_numbers<[1], [0], [0], [1], [0, 0, 1, 1], [], []>} : vector<256x128xbf16>, vector<128x128xbf16>, vector<256x128xf32> -> vector<256x128xf32>
      %35 = arith.truncf %31 : vector<256x128xf32> to vector<256x128xbf16>
      %c0_30 = arith.constant 0 : index
      %c0_31 = arith.constant 0 : index
      %36 = vector.load %arg9[%c0_30, %c0_31] : memref<256x256xbf16, #tpu.memory_space<vmem>>, vector<256x128xbf16>
      tpu.vector_store %arg9[%c0_30, %c0_31], %35 {strides = array<i32>} : memref<256x256xbf16, #tpu.memory_space<vmem>>, vector<256x128xbf16>,
      %37 = arith.truncf %34 : vector<256x128xf32> to vector<256x128xbf16>
      %c0_32 = arith.constant 0 : index
      %c128_33 = arith.constant 128 : index
      %38 = vector.load %arg9[%c0_32, %c128_33] : memref<256x256xbf16, #tpu.memory_space<vmem>>, vector<256x128xbf16>
      tpu.vector_store %arg9[%c0_32, %c128_33], %37 {strides = array<i32>} : memref<256x256xbf16, #tpu.memory_space<vmem>>, vector<256x128xbf16>,
    } else {
    }
    return
  }
  func.func @transform_0(%arg0: i32, %arg1: i32) -> (i32, i32) {
    %c0_i32 = arith.constant 0 : i32
    return %arg0, %arg1 : i32, i32
  }
  func.func @transform_1(%arg0: i32, %arg1: i32) -> (i32, i32) {
    %c0_i32 = arith.constant 0 : i32
    return %arg0, %arg1 : i32, i32
  }
  func.func @transform_2(%arg0: i32, %arg1: i32) -> (i32, i32) {
    %c0_i32 = arith.constant 0 : i32
    %c0_i32_0 = arith.constant 0 : i32
    return %arg1, %c0_i32 : i32, i32
  }
  func.func @transform_3(%arg0: i32, %arg1: i32) -> (i32, i32) {
    %c0_i32 = arith.constant 0 : i32
    %c0_i32_0 = arith.constant 0 : i32
    %c0_i32_1 = arith.constant 0 : i32
    return %c0_i32, %c0_i32_0 : i32, i32
  }
  func.func @transform_4(%arg0: i32, %arg1: i32) -> (i32, i32) {
    %c0_i32 = arith.constant 0 : i32
    %c0_i32_0 = arith.constant 0 : i32
    %c0_i32_1 = arith.constant 0 : i32
    return %c0_i32, %c0_i32_0 : i32, i32
  }
  func.func @transform_5(%arg0: i32, %arg1: i32) -> (i32, i32) {
    %c0_i32 = arith.constant 0 : i32
    %c0_i32_0 = arith.constant 0 : i32
    %c0_i32_1 = arith.constant 0 : i32
    return %c0_i32, %c0_i32_0 : i32, i32
  }
  func.func @transform_6(%arg0: i32, %arg1: i32) -> (i32, i32) {
    %c0_i32 = arith.constant 0 : i32
    %c0_i32_0 = arith.constant 0 : i32
    %c0_i32_1 = arith.constant 0 : i32
    return %c0_i32, %c0_i32_0 : i32, i32
  }
  func.func @transform_7(%arg0: i32, %arg1: i32) -> (i32, i32) {
    %c0_i32 = arith.constant 0 : i32
    %c0_i32_0 = arith.constant 0 : i32
    return %arg0, %c0_i32 : i32, i32
  }
}

</mosaic_0001>

<bundles_post_ra>
// kernel: tpu_custom_call.1
= control target key start
LH: loop header
LB: loop body
LE: loop exit
PB: predicated region body
PF: predicated region fallthrough
CT: control target
= control target key end

     0   :  { %12 = vsyncpa [#allocation4], 0  ;;  %s3717_s0 = inlined_call_operand.hbm [shape: bf16[256,256], index: 0, kind: input, shape index: {}]   ;;  %s3718_s1 = inlined_call_operand.hbm [shape: bf16[256,256], index: 1, kind: input, shape index: {}]   ;;  %s3719_s2 = inlined_call_operand.hbm [shape: bf16[256,128], index: 2, kind: input, shape index: {}]   ;;  %s3720_s3 = inlined_call_operand.hbm [shape: bf16[128,256], index: 3, kind: input, shape index: {}]   ;;  %s3721_s4 = inlined_call_operand.vmem [shape: f32[1,256], index: 4, kind: input, shape index: {}]   ;;  %s3722_s5 = inlined_call_operand.hbm [shape: bf16[128,128], index: 5, kind: input, shape index: {}]   ;;  %s3723_s6 = inlined_call_operand.hbm [shape: bf16[128,128], index: 6, kind: input, shape index: {}]   ;;  %s3724_s7 = inlined_call_operand.hbm [shape: bf16[256,256], index: 7, kind: output, shape index: {}]  }
   0x1   :  { %13 = vsyncpa [#allocation7], 0 }
   0x2   :  { %14 = vsyncpa [#allocation10], 0 }
   0x3   :  { %15 = vsyncpa [#allocation13], 0 }
   0x4   :  { %16 = vsyncpa [#allocation5], 0  ;;  %s34_s26 = sshll.u32 %s3718_s1, 4  ;;  %s3313_s27 = smov [#allocation6]   ;;  %s35_s26 = int_to_ptr.hbm [resolvable:$true] %s34_s26 }
   0x5   :  { %s36_s28 = sshll.u32 %s3313_s27, 4  ;;  %s60_s8 = sshll.u32 %s3720_s3, 4  ;;  %s37_s28 = int_to_ptr.vmem [resolvable:$true] %s36_s28  ;;  %s61_s8 = int_to_ptr.hbm [resolvable:$true] %s60_s8 }
   0x6   :  { %s3314_s9 = smov 128   ;;  %s3315_s10 = smov 8  }
   0x7   :  { %42 = dma.hbm_to_vmem [thread:$0]  %s35_s26, 4096, %s37_s28, [#allocation7], %s3314_s9, %s3314_s9, %s3315_s10  }
   0x8   :  { %s3316_s11 = smov [#allocation9]   ;;  %s21_s1 = sshll.u32 %s3717_s0, 4  ;;  %s22_s1 = int_to_ptr.hbm [resolvable:$true] %s21_s1 }
   0x9   :  { %s62_s12 = sshll.u32 %s3316_s11, 4  ;;  %s47_s16 = sshll.u32 %s3719_s2, 4  ;;  %s63_s12 = int_to_ptr.vmem [resolvable:$true] %s62_s12  ;;  %s48_s16 = int_to_ptr.hbm [resolvable:$true] %s47_s16 }
   0xa   :  { %68 = dma.hbm_to_vmem [thread:$0]  %s61_s8, 2048, %s63_s12, [#allocation10], %s3314_s9, %s3314_s9, %s3315_s10  }
   0xb   :  { %s3317_s17 = smov [#allocation3]   ;;  %s3318_s19 = smov [#allocation8]  }
   0xc   :  { %s23_s18 = sshll.u32 %s3317_s17, 4  ;;  %s49_s0 = sshll.u32 %s3318_s19, 4  ;;  %s24_s18 = int_to_ptr.vmem [resolvable:$true] %s23_s18  ;;  %s50_s0 = int_to_ptr.vmem [resolvable:$true] %s49_s0 }
   0xd   :  { %29 = dma.hbm_to_vmem [thread:$0]  %s22_s1, 4096, %s24_s18, [#allocation4], %s3314_s9, %s3314_s9, %s3315_s10  }
   0xe   :  { %s3319_s20 = smov 64   ;;  %s3320_s21 = smov 4  }
   0xf   :  { %55 = dma.hbm_to_vmem [thread:$0]  %s48_s16, 2048, %s50_s0, [#allocation7], %s3319_s20, %s3319_s20, %s3320_s21  }
  0x10   :  { %s75_s24 = sshll.u32 %s3722_s5, 4  ;;  %s3321_s2 = smov [#allocation11]   ;;  %s76_s24 = int_to_ptr.hbm [resolvable:$true] %s75_s24 }
  0x11   :  { %s77_s25 = sshll.u32 %s3321_s2, 4  ;;  %s88_s28 = sshll.u32 %s3723_s6, 4  ;;  %s78_s25 = int_to_ptr.vmem [resolvable:$true] %s77_s25  ;;  %s89_s28 = int_to_ptr.hbm [resolvable:$true] %s88_s28 }
  0x12   :  { %83 = dma.hbm_to_vmem [thread:$0]  %s76_s24, 1024, %s78_s25, [#allocation10], %s3319_s20, %s3319_s20, %s3320_s21  }
  0x13   :  { %s3322_s29 = smov [#allocation12]  }
  0x14   :  { %s90_s30 = sshll.u32 %s3322_s29, 4  ;;  %s91_s30 = int_to_ptr.vmem [resolvable:$true] %s90_s30 }
  0x15   :  { %96 = dma.hbm_to_vmem [thread:$0]  %s89_s28, 1024, %s91_s30, [#allocation13], %s3319_s20, %s3319_s20, %s3320_s21  }
  0x16   :  { %3303 = dma.done.wait [#allocation4], 4096  }
  0x17   :  { %3304 = vsyncadd [#allocation4], 4294963200 }
  0x18   :  { %3305 = dma.done.wait [#allocation7], 6144  }
  0x19   :  { %3306 = vsyncadd [#allocation7], 4294961152 }
  0x1a   :  { %3307 = dma.done.wait [#allocation10], 3072  }
  0x1b   :  { %3308 = vsyncadd [#allocation10], 4294964224 }
  0x1c   :  { %3309 = dma.done.wait [#allocation13], 1024  }
  0x1d   :  { %3310 = vsyncadd [#allocation13], 4294966272  ;;  %v2686_v0 = vld [vmem:[#allocation9 + $0x70] sm:$0xf]  ;;  %v3043_v1 = vld [vmem:[#allocation9 + $0x74] sm:$0xf0] }
  0x1e   :  { %v3042_v2 = vld [vmem:[#allocation9 + $0x74] sm:$0xf]  ;;  %v2687_v3 = vor.u32 %v3043_v1, %v2686_v0  ;;  %v2688_v4 = vld [vmem:[#allocation9 + $0x78] sm:$0xf0]  ;;  %v2678_v5 = vld [vmem:[#allocation9 + $0x60] sm:$0xf] }
  0x1f   :  { %v3041_v6 = vld [vmem:[#allocation9 + $0x64] sm:$0xf0]  ;;  %v2691_v7 = vor.u32 %v3042_v2, %v2688_v4  ;;  %v3040_v8 = vld [vmem:[#allocation9 + $0x64] sm:$0xf]  ;;  %v2680_v9 = vld [vmem:[#allocation9 + $0x68] sm:$0xf0] }
  0x20   :  { %413 = vmatpush.bf16.msra.mxu0 %v2687_v3  ;;  %v2679_v10 = vor.u32 %v3041_v6, %v2678_v5  ;;  %v2683_v11 = vor.u32 %v3040_v8, %v2680_v9  ;;  %v2670_v12 = vld [vmem:[#allocation9 + $0x50] sm:$0xf]  ;;  %v3039_v13 = vld [vmem:[#allocation9 + $0x54] sm:$0xf0]  ;;  %v3038_v14 = vld [vmem:[#allocation9 + $0x54] sm:$0xf] }
  0x21   :  { %502 = vmatpush.bf16.msra.mxu1 %v2691_v7  ;;  %v2672_v15 = vld [vmem:[#allocation9 + $0x58] sm:$0xf0]  ;;  %v2671_v16 = vor.u32 %v3039_v13, %v2670_v12  ;;  %v2662_v18 = vld [vmem:[#allocation9 + $0x40] sm:$0xf]  ;;  %v3037_v19 = vld [vmem:[#allocation9 + $0x44] sm:$0xf0] }
  0x22   :  { %v2675_v17 = vor.u32 %v3038_v14, %v2672_v15  ;;  %v3036_v20 = vld [vmem:[#allocation9 + $0x44] sm:$0xf]  ;;  %v2664_v21 = vld [vmem:[#allocation9 + $0x48] sm:$0xf0]  ;;  %v2663_v22 = vor.u32 %v3037_v19, %v2662_v18  ;;  %v2654_v24 = vld [vmem:[#allocation9 + $0x30] sm:$0xf] }
  0x23   :  { %v2667_v23 = vor.u32 %v3036_v20, %v2664_v21  ;;  %v3035_v25 = vld [vmem:[#allocation9 + $0x34] sm:$0xf0]  ;;  %v3034_v26 = vld [vmem:[#allocation9 + $0x34] sm:$0xf]  ;;  %v2656_v27 = vld [vmem:[#allocation9 + $0x38] sm:$0xf0] }
  0x24   :  { %414 = vmatpush.bf16.msra.mxu0 %v2679_v10  ;;  %v2655_v28 = vor.u32 %v3035_v25, %v2654_v24  ;;  %v2659_v29 = vor.u32 %v3034_v26, %v2656_v27  ;;  %v2646_v30 = vld [vmem:[#allocation9 + $0x20] sm:$0xf]  ;;  %v3033_v31 = vld [vmem:[#allocation9 + $0x24] sm:$0xf0]  ;;  %v3032_v32 = vld [vmem:[#allocation9 + $0x24] sm:$0xf] }
  0x25   :  { %503 = vmatpush.bf16.msra.mxu1 %v2683_v11  ;;  %v2648_v33 = vld [vmem:[#allocation9 + $0x28] sm:$0xf0]  ;;  %v2647_v34 = vor.u32 %v3033_v31, %v2646_v30  ;;  %v2638_v36 = vld [vmem:[#allocation9 + $0x10] sm:$0xf]  ;;  %v3031_v37 = vld [vmem:[#allocation9 + $0x14] sm:$0xf0] }
  0x26   :  { %v2651_v35 = vor.u32 %v3032_v32, %v2648_v33  ;;  %v3030_v38 = vld [vmem:[#allocation9 + $0x14] sm:$0xf]  ;;  %v2640_v39 = vld [vmem:[#allocation9 + $0x18] sm:$0xf0]  ;;  %v2639_v40 = vor.u32 %v3031_v37, %v2638_v36  ;;  %v2630_v42 = vld [vmem:[#allocation9] sm:$0xf] }
  0x27   :  { %v2643_v41 = vor.u32 %v3030_v38, %v2640_v39  ;;  %v3029_v43 = vld [vmem:[#allocation9 + $0x4] sm:$0xf0]  ;;  %v3028_v44 = vld [vmem:[#allocation9 + $0x4] sm:$0xf]  ;;  %v2632_v45 = vld [vmem:[#allocation9 + $0x8] sm:$0xf0] }
  0x28   :  { %415 = vmatpush.bf16.msra.mxu0 %v2671_v16  ;;  %v2631_v46 = vor.u32 %v3029_v43, %v2630_v42  ;;  %v2635_v47 = vor.u32 %v3028_v44, %v2632_v45  ;;  %v3012_v48 = vld [vmem:[#allocation8] sm:$0xff]  ;;  %v3013_v49 = vld [vmem:[#allocation8 + $0x8] sm:$0xff]  ;;  %v3014_v50 = vld [vmem:[#allocation8 + $0x10] sm:$0xff]  ;;  %s2548_s13 = sshll.u32 %s3724_s7, 4  ;;  %s2549_s13 = int_to_ptr.hbm [resolvable:$true] %s2548_s13 }
  0x29   :  { %504 = vmatpush.bf16.msra.mxu1 %v2675_v17  ;;  %v3015_v51 = vld [vmem:[#allocation8 + $0x18] sm:$0xff]  ;;  %v3016_v52 = vld [vmem:[#allocation8 + $0x20] sm:$0xff]  ;;  %v3017_v53 = vld [vmem:[#allocation8 + $0x28] sm:$0xff] }
  0x2a   :  { %v3018_v54 = vld [vmem:[#allocation8 + $0x30] sm:$0xff]  ;;  %v3019_v55 = vld [vmem:[#allocation8 + $0x38] sm:$0xff]  ;;  %v3020_v56 = vld [vmem:[#allocation8 + $0x40] sm:$0xff] }
  0x2b   :  { %v3021_v5 = vld [vmem:[#allocation8 + $0x48] sm:$0xff]  ;;  %v3022_v18 = vld [vmem:[#allocation8 + $0x50] sm:$0xff]  ;;  %v3023_v31 = vld [vmem:[#allocation8 + $0x58] sm:$0xff] }
  0x2c   :  { %416 = vmatpush.bf16.msra.mxu0 %v2663_v22  ;;  %v3024_v44 = vld [vmem:[#allocation8 + $0x60] sm:$0xff] }
  0x2d   :  { %505 = vmatpush.bf16.msra.mxu1 %v2667_v23 }
  0x30   :  { %417 = vmatpush.bf16.msra.mxu0 %v2655_v28 }
  0x31   :  { %506 = vmatpush.bf16.msra.mxu1 %v2659_v29 }
  0x34   :  { %418 = vmatpush.bf16.msra.mxu0 %v2647_v34 }
  0x35   :  { %507 = vmatpush.bf16.msra.mxu1 %v2651_v35 }
  0x38   :  { %419 = vmatpush.bf16.msra.mxu0 %v2639_v40 }
  0x39   :  { %508 = vmatpush.bf16.msra.mxu1 %v2643_v41 }
  0x3c   :  { %420 = vmatpush.bf16.msra.mxu0 %v2631_v46 }
  0x3d   :  { %509 = vmatpush.bf16.msra.mxu1 %v2635_v47 }
  0x3f   :  { %421 = vmatmul.bf16.vlgmr.msra.gmra.mxu0 %v3012_v48 }
  0x40   :  { %510 = vmatmul.bf16.vlgmr.msra.gmra.mxu1 %v3012_v48 }
  0x4f   :  { %426 = vmatmul.bf16.gmra.mxu0 %v3013_v49 }
  0x50   :  { %515 = vmatmul.bf16.gmra.mxu1 %v3013_v49 }
  0x5f   :  { %431 = vmatmul.bf16.gmra.mxu0 %v3014_v50 }
  0x60   :  { %520 = vmatmul.bf16.gmra.mxu1 %v3014_v50  ;;  %v3025_v50 = vld [vmem:[#allocation8 + $0x68] sm:$0xff] }
  0x6f   :  { %436 = vmatmul.bf16.gmra.mxu0 %v3015_v51 }
  0x70   :  { %525 = vmatmul.bf16.gmra.mxu1 %v3015_v51 }
  0x7f   :  { %441 = vmatmul.bf16.gmra.mxu0 %v3016_v52 }
  0x80   :  { %530 = vmatmul.bf16.gmra.mxu1 %v3016_v52 }
  0x8f   :  { %446 = vmatmul.bf16.gmra.mxu0 %v3017_v53 }
  0x90   :  { %535 = vmatmul.bf16.gmra.mxu1 %v3017_v53 }
  0x9f   :  { %451 = vmatmul.bf16.gmra.mxu0 %v3018_v54 }
  0xa0   :  { %540 = vmatmul.bf16.gmra.mxu1 %v3018_v54 }
  0xaf   :  { %456 = vmatmul.bf16.gmra.mxu0 %v3019_v55 }
  0xb0   :  { %545 = vmatmul.bf16.gmra.mxu1 %v3019_v55  ;;  %v3026_v55 = vld [vmem:[#allocation8 + $0x70] sm:$0xff] }
  0xbc   :  { %v422_v57 = vpop.f32.mrf.mxu0 }
  0xbd   :  { %v511_v58 = vpop.f32.mrf.mxu1 }
  0xbe   :  { %v591_v59 = vpack.c.bf16 %v511_v58, %v422_v57 }
  0xbf   :  { %461 = vmatmul.bf16.gmra.mxu0 %v3020_v56 }
  0xc0   :  { %550 = vmatmul.bf16.gmra.mxu1 %v3020_v56  ;;  %v879_v63 = vunpack.c.l.b16 %v591_v59  ;;  %v1409_v0 = vunpack.c.h.b16 %v591_v59 }
  0xc4   :  { %v424_v60 = vpop.f32.mrf.mxu0 }
  0xc5   :  { %v513_v61 = vpop.f32.mrf.mxu1 }
  0xc6   :  { %v592_v62 = vpack.c.bf16 %v513_v61, %v424_v60  ;;  %v3027_v60 = vld [vmem:[#allocation8 + $0x78] sm:$0xff] }
  0xc8   :  { %v880_v1 = vunpack.c.l.b16 %v592_v62  ;;  %v1410_v2 = vunpack.c.h.b16 %v592_v62 }
  0xca   :  { %v3391_v3 = vpack.c.b16 %v880_v1, %v879_v63  ;;  %v3393_v4 = vpack.c.b16 %v1410_v2, %v1409_v0 }
  0xcc   :  { %v427_v6 = vpop.f32.mrf.mxu0 }
  0xcd   :  { %v516_v7 = vpop.f32.mrf.mxu1 }
  0xce   :  { %v593_v8 = vpack.c.bf16 %v516_v7, %v427_v6 }
  0xcf   :  { %466 = vmatmul.bf16.gmra.mxu0 %v3021_v5 }
  0xd0   :  { %555 = vmatmul.bf16.gmra.mxu1 %v3021_v5  ;;  %v881_v12 = vunpack.c.l.b16 %v593_v8  ;;  %v1411_v13 = vunpack.c.h.b16 %v593_v8 }
  0xd4   :  { %v429_v9 = vpop.f32.mrf.mxu0 }
  0xd5   :  { %v518_v10 = vpop.f32.mrf.mxu1 }
  0xd6   :  { %v594_v11 = vpack.c.bf16 %v518_v10, %v429_v9 }
  0xd8   :  { %v882_v14 = vunpack.c.l.b16 %v594_v11  ;;  %v1412_v15 = vunpack.c.h.b16 %v594_v11 }
  0xda   :  { %v3395_v16 = vpack.c.b16 %v882_v14, %v881_v12  ;;  %v3397_v17 = vpack.c.b16 %v1412_v15, %v1411_v13 }
  0xdc   :  { %v432_v19 = vpop.f32.mrf.mxu0 }
  0xdd   :  { %v521_v20 = vpop.f32.mrf.mxu1 }
  0xde   :  { %v595_v21 = vpack.c.bf16 %v521_v20, %v432_v19 }
  0xdf   :  { %471 = vmatmul.bf16.gmra.mxu0 %v3022_v18 }
  0xe0   :  { %560 = vmatmul.bf16.gmra.mxu1 %v3022_v18  ;;  %v883_v25 = vunpack.c.l.b16 %v595_v21  ;;  %v1413_v26 = vunpack.c.h.b16 %v595_v21 }
  0xe4   :  { %v434_v22 = vpop.f32.mrf.mxu0 }
  0xe5   :  { %v523_v23 = vpop.f32.mrf.mxu1 }
  0xe6   :  { %v596_v24 = vpack.c.bf16 %v523_v23, %v434_v22 }
  0xe8   :  { %v884_v27 = vunpack.c.l.b16 %v596_v24  ;;  %v1414_v28 = vunpack.c.h.b16 %v596_v24 }
  0xea   :  { %v3399_v29 = vpack.c.b16 %v884_v27, %v883_v25  ;;  %v3401_v30 = vpack.c.b16 %v1414_v28, %v1413_v26 }
  0xec   :  { %v437_v32 = vpop.f32.mrf.mxu0 }
  0xed   :  { %v526_v33 = vpop.f32.mrf.mxu1 }
  0xee   :  { %v597_v34 = vpack.c.bf16 %v526_v33, %v437_v32 }
  0xef   :  { %476 = vmatmul.bf16.gmra.mxu0 %v3023_v31 }
  0xf0   :  { %565 = vmatmul.bf16.gmra.mxu1 %v3023_v31  ;;  %v885_v38 = vunpack.c.l.b16 %v597_v34  ;;  %v1415_v39 = vunpack.c.h.b16 %v597_v34 }
  0xf4   :  { %v439_v35 = vpop.f32.mrf.mxu0 }
  0xf5   :  { %v528_v36 = vpop.f32.mrf.mxu1 }
  0xf6   :  { %v598_v37 = vpack.c.bf16 %v528_v36, %v439_v35 }
  0xf8   :  { %v886_v40 = vunpack.c.l.b16 %v598_v37  ;;  %v1416_v41 = vunpack.c.h.b16 %v598_v37 }
  0xfa   :  { %v3403_v42 = vpack.c.b16 %v886_v40, %v885_v38  ;;  %v3405_v43 = vpack.c.b16 %v1416_v41, %v1415_v39 }
  0xfc   :  { %v442_v45 = vpop.f32.mrf.mxu0 }
  0xfd   :  { %v531_v46 = vpop.f32.mrf.mxu1 }
  0xfe   :  { %v3407_v47 = vpack.c.bf16 %v531_v46, %v442_v45 }
  0xff   :  { %481 = vmatmul.bf16.gmra.mxu0 %v3024_v44 }
 0x100   :  { %570 = vmatmul.bf16.gmra.mxu1 %v3024_v44  ;;  %v887_v37 = vunpack.c.l.b16 %v3407_v47  ;;  %v1417_v38 = vunpack.c.h.b16 %v3407_v47 }
 0x104   :  { %v444_v48 = vpop.f32.mrf.mxu0 }
 0x105   :  { %v533_v49 = vpop.f32.mrf.mxu1 }
 0x106   :  { %v600_v22 = vpack.c.bf16 %v533_v49, %v444_v48  ;;  %v2694_v49 = vld [vmem:[#allocation3] sm:$0xf] }
 0x108   :  { %v888_v35 = vunpack.c.l.b16 %v600_v22  ;;  %v1418_v36 = vunpack.c.h.b16 %v600_v22 }
 0x10a   :  { %v915_v41 = vpack.c.b16 %v888_v35, %v887_v37  ;;  %v1445_v44 = vpack.c.b16 %v1418_v36, %v1417_v38 }
 0x10c   :  { %v447_v51 = vpop.f32.mrf.mxu0 }
 0x10d   :  { %v536_v52 = vpop.f32.mrf.mxu1 }
 0x10e   :  { %v601_v18 = vpack.c.bf16 %v536_v52, %v447_v51 }
 0x10f   :  { %486 = vmatmul.bf16.gmra.mxu0 %v3025_v50 }
 0x110   :  { %575 = vmatmul.bf16.gmra.mxu1 %v3025_v50  ;;  %v889_v31 = vunpack.c.l.b16 %v601_v18  ;;  %v1419_v32 = vunpack.c.h.b16 %v601_v18  ;;  %v3045_v50 = vld [vmem:[#allocation3 + $0x4] sm:$0xf0] }
 0x114   :  { %v449_v53 = vpop.f32.mrf.mxu0 }
 0x115   :  { %v538_v54 = vpop.f32.mrf.mxu1 }
 0x116   :  { %v602_v11 = vpack.c.bf16 %v538_v54, %v449_v53 }
 0x118   :  { %v890_v24 = vunpack.c.l.b16 %v602_v11  ;;  %v1420_v28 = vunpack.c.h.b16 %v602_v11  ;;  %v3053_v11 = vld [vmem:[#allocation3 + $0x44] sm:$0xf0] }
 0x11a   :  { %v916_v33 = vpack.c.b16 %v890_v24, %v889_v31  ;;  %v1446_v34 = vpack.c.b16 %v1420_v28, %v1419_v32  ;;  %v2742_v28 = vld [vmem:[#allocation3 + $0x60] sm:$0xf]  ;;  %v3057_v31 = vld [vmem:[#allocation3 + $0x64] sm:$0xf0] }
 0x11b   :  { %v2743_v36 = vor.u32 %v3057_v31, %v2742_v28  ;;  %v2830_v31 = vld [vmem:[#allocation6 + $0x10] sm:$0xf] }
 0x11c   :  { %v452_v56 = vpop.f32.mrf.mxu0 }
 0x11d   :  { %v541_v57 = vpop.f32.mrf.mxu1 }
 0x11e   :  { %v603_v6 = vpack.c.bf16 %v541_v57, %v452_v56 }
 0x11f   :  { %491 = vmatmul.bf16.gmra.mxu0 %v3026_v55 }
 0x120   :  { %580 = vmatmul.bf16.gmra.mxu1 %v3026_v55  ;;  %v891_v19 = vunpack.c.l.b16 %v603_v6  ;;  %v1421_v20 = vunpack.c.h.b16 %v603_v6 }
 0x124   :  { %v454_v58 = vpop.f32.mrf.mxu0 }
 0x125   :  { %v543_v59 = vpop.f32.mrf.mxu1 }
 0x126   :  { %v604_v2 = vpack.c.bf16 %v543_v59, %v454_v58  ;;  %v3049_v58 = vld [vmem:[#allocation3 + $0x24] sm:$0xf0] }
 0x128   :  { %v892_v14 = vunpack.c.l.b16 %v604_v2  ;;  %v1422_v15 = vunpack.c.h.b16 %v604_v2  ;;  %v3051_v2 = vld [vmem:[#allocation3 + $0x34] sm:$0xf0] }
 0x12a   :  { %v917_v26 = vpack.c.b16 %v892_v14, %v891_v19  ;;  %v1447_v27 = vpack.c.b16 %v1422_v15, %v1421_v20  ;;  %v2734_v19 = vld [vmem:[#allocation3 + $0x50] sm:$0xf]  ;;  %v3055_v20 = vld [vmem:[#allocation3 + $0x54] sm:$0xf0] }
 0x12b   :  { %v2735_v22 = vor.u32 %v3055_v20, %v2734_v19 }
 0x12c   :  { %v457_v61 = vpop.f32.mrf.mxu0 }
 0x12d   :  { %v546_v62 = vpop.f32.mrf.mxu1 }
 0x12e   :  { %v605_v63 = vpack.c.bf16 %v546_v62, %v457_v61 }
 0x12f   :  { %496 = vmatmul.bf16.gmra.mxu0 %v3027_v60 }
 0x130   :  { %585 = vmatmul.bf16.gmra.mxu1 %v3027_v60  ;;  %v1423_v7 = vunpack.c.h.b16 %v605_v63  ;;  %v893_v8 = vunpack.c.l.b16 %v605_v63 }
 0x134   :  { %v459_v0 = vpop.f32.mrf.mxu0 }
 0x135   :  { %v548_v1 = vpop.f32.mrf.mxu1 }
 0x136   :  { %v606_v5 = vpack.c.bf16 %v548_v1, %v459_v0  ;;  %v2718_v1 = vld [vmem:[#allocation3 + $0x30] sm:$0xf] }
 0x137   :  { %v2719_v6 = vor.u32 %v3051_v2, %v2718_v1 }
 0x138   :  { %v894_v9 = vunpack.c.l.b16 %v606_v5  ;;  %v1424_v10 = vunpack.c.h.b16 %v606_v5 }
 0x13a   :  { %v918_v12 = vpack.c.b16 %v894_v9, %v893_v8  ;;  %v1448_v13 = vpack.c.b16 %v1424_v10, %v1423_v7  ;;  %v2726_v10 = vld [vmem:[#allocation3 + $0x40] sm:$0xf] }
 0x13c   :  { %943 = vmatpush.bf16.msra.mxu2 %v918_v12  ;;  %1473 = vmatpush.bf16.msrb.mxu0 %v1448_v13  ;;  %v462_v21 = vpop.f32.mrf.mxu0  ;;  %v2727_v13 = vor.u32 %v3053_v11, %v2726_v10  ;;  %v2750_v10 = vld [vmem:[#allocation3 + $0x70] sm:$0xf]  ;;  %v3059_v11 = vld [vmem:[#allocation3 + $0x74] sm:$0xf0] }
 0x13d   :  { %v551_v23 = vpop.f32.mrf.mxu1 }
 0x13e   :  { %v3409_v25 = vpack.c.bf16 %v551_v23, %v462_v21 }
 0x140   :  { %944 = vmatpush.bf16.msra.mxu2 %v917_v26  ;;  %1474 = vmatpush.bf16.msrb.mxu0 %v1447_v27 }
 0x144   :  { %945 = vmatpush.bf16.msra.mxu2 %v916_v33  ;;  %1475 = vmatpush.bf16.msrb.mxu0 %v1446_v34  ;;  %v3413_v39 = vpop.f32.mrf.mxu0 }
 0x145   :  { %v3415_v40 = vpop.f32.mrf.mxu1 }
 0x148   :  { %946 = vmatpush.bf16.msra.mxu2 %v915_v41  ;;  %1476 = vmatpush.bf16.msrb.mxu0 %v1445_v44 }
 0x14c   :  { %947 = vmatpush.bf16.msra.mxu2 %v3403_v42  ;;  %1477 = vmatpush.bf16.msrb.mxu0 %v3405_v43  ;;  %v467_v45 = vpop.f32.mrf.mxu0  ;;  %v2695_v42 = vor.u32 %v3045_v50, %v2694_v49 }
 0x14d   :  { %v556_v46 = vpop.f32.mrf.mxu1 }
 0x14e   :  { %v3419_v48 = vpack.c.bf16 %v556_v46, %v467_v45 }
 0x150   :  { %948 = vmatpush.bf16.msra.mxu2 %v3399_v29  ;;  %1478 = vmatpush.bf16.msrb.mxu0 %v3401_v30 }
 0x154   :  { %949 = vmatpush.bf16.msra.mxu2 %v3395_v16  ;;  %1479 = vmatpush.bf16.msrb.mxu0 %v3397_v17  ;;  %v3425_v47 = vpop.f32.mrf.mxu0  ;;  %v2702_v16 = vld [vmem:[#allocation3 + $0x10] sm:$0xf]  ;;  %v3047_v17 = vld [vmem:[#allocation3 + $0x14] sm:$0xf0] }
 0x155   :  { %v3427_v51 = vpop.f32.mrf.mxu1  ;;  %v2703_v54 = vor.u32 %v3047_v17, %v2702_v16 }
 0x158   :  { %950 = vmatpush.bf16.msra.mxu2 %v3391_v3  ;;  %1480 = vmatpush.bf16.msrb.mxu0 %v3393_v4  ;;  %v2710_v4 = vld [vmem:[#allocation3 + $0x20] sm:$0xf] }
 0x159   :  { %v2711_v60 = vor.u32 %v3049_v58, %v2710_v4  ;;  %v2822_v58 = vld [vmem:[#allocation6] sm:$0xf] }
 0x15b   :  { %951 = vmatmul.bf16.vlgmr.msra.gmra.mxu2 %v2695_v42 }
 0x15c   :  { %v472_v43 = vpop.f32.mrf.mxu0 }
 0x15d   :  { %v561_v29 = vpop.f32.mrf.mxu1 }
 0x15e   :  { %v3431_v52 = vpack.c.bf16 %v561_v29, %v472_v43 }
 0x164   :  { %v3433_v30 = vpop.f32.mrf.mxu0 }
 0x165   :  { %v3435_v53 = vpop.f32.mrf.mxu1 }
 0x16b   :  { %956 = vmatmul.bf16.gmra.mxu2 %v2703_v54 }
 0x16c   :  { %v477_v55 = vpop.f32.mrf.mxu0 }
 0x16d   :  { %v566_v56 = vpop.f32.mrf.mxu1 }
 0x16e   :  { %v3437_v57 = vpack.c.bf16 %v566_v56, %v477_v55 }
 0x170   :  { %v1431_v19 = vunpack.c.h.b16 %v3437_v57 }
 0x174   :  { %v3439_v3 = vpop.f32.mrf.mxu0 }
 0x175   :  { %v3441_v59 = vpop.f32.mrf.mxu1 }
 0x176   :  { %v614_v2 = vpack.c.bf16 %v3441_v59, %v3439_v3  ;;  %v2751_v59 = vor.u32 %v3059_v11, %v2750_v10  ;;  %v3080_v10 = vld [vmem:[#allocation6 + $0x24] sm:$0xf]  ;;  %v2840_v11 = vld [vmem:[#allocation6 + $0x28] sm:$0xf0] }
 0x178   :  { %v1432_v3 = vunpack.c.h.b16 %v614_v2 }
 0x17b   :  { %961 = vmatmul.bf16.gmra.mxu2 %v2711_v60  ;;  %v3077_v60 = vld [vmem:[#allocation6 + $0x4] sm:$0xf0] }
 0x17c   :  { %v482_v61 = vpop.f32.mrf.mxu0 }
 0x17d   :  { %v571_v62 = vpop.f32.mrf.mxu1 }
 0x17e   :  { %v3443_v63 = vpack.c.bf16 %v571_v62, %v482_v61  ;;  %v2823_v61 = vor.u32 %v3077_v60, %v2822_v58  ;;  %v2766_v58 = vld [vmem:[#allocation3 + $0x90] sm:$0xf]  ;;  %v3063_v60 = vld [vmem:[#allocation3 + $0x94] sm:$0xf0] }
 0x180   :  { %1481 = vmatmul.bf16.vlgmr.msrb.gmra.mxu0 %v2823_v61 }
 0x184   :  { %v484_v0 = vpop.f32.mrf.mxu0 }
 0x185   :  { %v573_v5 = vpop.f32.mrf.mxu1 }
 0x186   :  { %v616_v17 = vpack.c.bf16 %v573_v5, %v484_v0  ;;  %v903_v0 = vunpack.c.l.b16 %v3443_v63  ;;  %v1433_v5 = vunpack.c.h.b16 %v3443_v63  ;;  %v610_v63 = vpack.c.bf16 %v3427_v51, %v3425_v47  ;;  %v3079_v47 = vld [vmem:[#allocation6 + $0x14] sm:$0xf0] }
 0x187   :  { %v2831_v51 = vor.u32 %v3079_v47, %v2830_v31  ;;  %v2862_v47 = vld [vmem:[#allocation6 + $0x50] sm:$0xf] }
 0x188   :  { %v1428_v28 = vunpack.c.h.b16 %v610_v63 }
 0x18b   :  { %966 = vmatmul.bf16.gmra.mxu2 %v2719_v6 }
 0x18c   :  { %v487_v7 = vpop.f32.mrf.mxu0 }
 0x18d   :  { %v576_v8 = vpop.f32.mrf.mxu1 }
 0x18e   :  { %v617_v43 = vpack.c.bf16 %v576_v8, %v487_v7  ;;  %v904_v8 = vunpack.c.l.b16 %v616_v17 }
 0x190   :  { %v905_v62 = vunpack.c.l.b16 %v617_v43  ;;  %v1435_v1 = vunpack.c.h.b16 %v617_v43  ;;  %1486 = vmatmul.bf16.gmra.mxu0 %v2831_v51  ;;  %v3087_v51 = vld [vmem:[#allocation6 + $0x54] sm:$0xf0] }
 0x194   :  { %v489_v9 = vpop.f32.mrf.mxu0 }
 0x195   :  { %v578_v12 = vpop.f32.mrf.mxu1 }
 0x196   :  { %v618_v45 = vpack.c.bf16 %v578_v12, %v489_v9  ;;  %v1434_v9 = vunpack.c.h.b16 %v616_v17  ;;  %v612_v12 = vpack.c.bf16 %v3435_v53, %v3433_v30  ;;  %v899_v30 = vunpack.c.l.b16 %v3431_v52 }
 0x197   :  { %v1429_v53 = vunpack.c.h.b16 %v3431_v52 }
 0x198   :  { %v906_v56 = vunpack.c.l.b16 %v618_v45  ;;  %v1436_v4 = vunpack.c.h.b16 %v618_v45  ;;  %v2758_v45 = vld [vmem:[#allocation3 + $0x80] sm:$0xf] }
 0x19a   :  { %v924_v6 = vpack.c.b16 %v906_v56, %v905_v62  ;;  %v1454_v7 = vpack.c.b16 %v1436_v4, %v1435_v1  ;;  %v3078_v56 = vld [vmem:[#allocation6 + $0x14] sm:$0xf]  ;;  %v2832_v4 = vld [vmem:[#allocation6 + $0x18] sm:$0xf0] }
 0x19b   :  { %971 = vmatmul.bf16.gmra.mxu2 %v2727_v13  ;;  %v923_v13 = vpack.c.b16 %v904_v8, %v903_v0  ;;  %v2835_v1 = vor.u32 %v3078_v56, %v2832_v4  ;;  %v3083_v8 = vld [vmem:[#allocation6 + $0x34] sm:$0xf0]  ;;  %v3048_v0 = vld [vmem:[#allocation3 + $0x24] sm:$0xf] }
 0x19c   :  { %v492_v14 = vpop.f32.mrf.mxu0  ;;  %v3115_v4 = vld [vmem:[#allocation11 + $0x38] sm:$0xff] }
 0x19d   :  { %v581_v15 = vpop.f32.mrf.mxu1  ;;  %2108 = vmatpush.bf16.msrb.mxu2 %v3115_v4  ;;  %v1782_v4 = vld [vmem:[%s3721_s4] sm:$0x3]  ;;  %s3323_s4 = smov [#allocation14]  }
 0x19e   :  { %v619_v35 = vpack.c.bf16 %v581_v15, %v492_v14  ;;  %v1453_v14 = vpack.c.b16 %v1434_v9, %v1433_v5  ;;  %v902_v15 = vunpack.c.l.b16 %v614_v2  ;;  %v2767_v2 = vor.u32 %v3063_v60, %v2766_v58  ;;  %v2712_v5 = vld [vmem:[#allocation3 + $0x28] sm:$0xf0]  ;;  %v3123_v58 = vld [vmem:[#allocation12 + $0x38] sm:$0xff]  ;;  %s2546_s8 = sshll.u32 %s3323_s4, 4  ;;  %s2547_s8 = int_to_ptr.vmem [resolvable:$true] %s2546_s8 }
 0x1a0   :  { %v907_v29 = vunpack.c.l.b16 %v619_v35  ;;  %v1437_v16 = vunpack.c.h.b16 %v619_v35 }
 0x1a4   :  { %v494_v18 = vpop.f32.mrf.mxu0 }
 0x1a5   :  { %v583_v21 = vpop.f32.mrf.mxu1 }
 0x1a6   :  { %v620_v33 = vpack.c.bf16 %v583_v21, %v494_v18  ;;  %v901_v18 = vunpack.c.l.b16 %v3437_v57  ;;  %v1452_v21 = vpack.c.b16 %v1432_v3, %v1431_v19  ;;  %v2843_v3 = vor.u32 %v3080_v10, %v2840_v11  ;;  %v2854_v19 = vld [vmem:[#allocation6 + $0x40] sm:$0xf] }
 0x1a7   :  { %v2806_v11 = vld [vmem:[#allocation3 + $0xe0] sm:$0xf] }
 0x1a8   :  { %v908_v50 = vunpack.c.l.b16 %v620_v33  ;;  %v1438_v42 = vunpack.c.h.b16 %v620_v33  ;;  %v922_v20 = vpack.c.b16 %v902_v15, %v901_v18  ;;  %v1427_v33 = vunpack.c.h.b16 %v3419_v48 }
 0x1a9   :  { %v2715_v15 = vor.u32 %v3048_v0, %v2712_v5  ;;  %v2872_v0 = vld [vmem:[#allocation6 + $0x68] sm:$0xf0]  ;;  %v3114_v5 = vld [vmem:[#allocation11 + $0x30] sm:$0xff] }
 0x1aa   :  { %v925_v54 = vpack.c.b16 %v908_v50, %v907_v29  ;;  %v1455_v55 = vpack.c.b16 %v1438_v42, %v1437_v16  ;;  %v3081_v16 = vld [vmem:[#allocation6 + $0x24] sm:$0xf0]  ;;  %2109 = vmatpush.bf16.msrb.mxu2 %v3114_v5 }
 0x1ab   :  { %976 = vmatmul.bf16.gmra.mxu2 %v2735_v22  ;;  %v900_v22 = vunpack.c.l.b16 %v612_v12 }
 0x1ac   :  { %v497_v23 = vpop.f32.mrf.mxu0 }
 0x1ad   :  { %v586_v24 = vpop.f32.mrf.mxu1  ;;  %v921_v57 = vpack.c.b16 %v900_v22, %v899_v30  ;;  %v2720_v22 = vld [vmem:[#allocation3 + $0x38] sm:$0xf0] }
 0x1ae   :  { %v621_v26 = vpack.c.bf16 %v586_v24, %v497_v23  ;;  %v1430_v23 = vunpack.c.h.b16 %v612_v12  ;;  %v608_v24 = vpack.c.bf16 %v3415_v40, %v3413_v39  ;;  %v895_v39 = vunpack.c.l.b16 %v3409_v25  ;;  %v2774_v12 = vld [vmem:[#allocation3 + $0xa0] sm:$0xf]  ;;  %v2848_v30 = vld [vmem:[#allocation6 + $0x38] sm:$0xf0] }
 0x1af   :  { %v1425_v40 = vunpack.c.h.b16 %v3409_v25  ;;  %v2838_v25 = vld [vmem:[#allocation6 + $0x20] sm:$0xf] }
 0x1b0   :  { %v1439_v37 = vunpack.c.h.b16 %v621_v26  ;;  %v909_v38 = vunpack.c.l.b16 %v621_v26  ;;  %v1451_v26 = vpack.c.b16 %v1430_v23, %v1429_v53  ;;  %v896_v35 = vunpack.c.l.b16 %v608_v24  ;;  %v3082_v23 = vld [vmem:[#allocation6 + $0x34] sm:$0xf]  ;;  %v2782_v53 = vld [vmem:[#allocation3 + $0xb0] sm:$0xf] }
 0x1b1   :  { %v2839_v17 = vor.u32 %v3081_v16, %v2838_v25  ;;  %v2798_v25 = vld [vmem:[#allocation3 + $0xd0] sm:$0xf]  ;;  %v3071_v16 = vld [vmem:[#allocation3 + $0xd4] sm:$0xf0] }
 0x1b2   :  { %v2799_v56 = vor.u32 %v3071_v16, %v2798_v25 }
 0x1b3   :  { %1491 = vmatmul.bf16.gmra.mxu0 %v2839_v17 }
 0x1b4   :  { %v499_v27 = vpop.f32.mrf.mxu0 }
 0x1b5   :  { %v588_v32 = vpop.f32.mrf.mxu1 }
 0x1b6   :  { %v622_v34 = vpack.c.bf16 %v588_v32, %v499_v27  ;;  %v898_v27 = vunpack.c.l.b16 %v610_v63  ;;  %v897_v32 = vunpack.c.l.b16 %v3419_v48  ;;  %v919_v48 = vpack.c.b16 %v896_v35, %v895_v39  ;;  %v3085_v63 = vld [vmem:[#allocation6 + $0x44] sm:$0xf0]  ;;  %v2856_v35 = vld [vmem:[#allocation6 + $0x48] sm:$0xf0] }
 0x1b8   :  { %v910_v41 = vunpack.c.l.b16 %v622_v34  ;;  %v1440_v44 = vunpack.c.h.b16 %v622_v34  ;;  %v920_v52 = vpack.c.b16 %v898_v27, %v897_v32  ;;  %v1450_v34 = vpack.c.b16 %v1428_v28, %v1427_v33  ;;  %v3052_v33 = vld [vmem:[#allocation3 + $0x44] sm:$0xf] }
 0x1b9   :  { %v2851_v27 = vor.u32 %v3082_v23, %v2848_v30  ;;  %v2863_v32 = vor.u32 %v3087_v51, %v2862_v47  ;;  %v3111_v30 = vld [vmem:[#allocation11 + $0x18] sm:$0xff]  ;;  %v2814_v47 = vld [vmem:[#allocation3 + $0xf0] sm:$0xf] }
 0x1ba   :  { %v926_v46 = vpack.c.b16 %v910_v41, %v909_v38  ;;  %v1456_v49 = vpack.c.b16 %v1440_v44, %v1439_v37  ;;  %v3044_v37 = vld [vmem:[#allocation3 + $0x4] sm:$0xf]  ;;  %v2696_v38 = vld [vmem:[#allocation3 + $0x8] sm:$0xf0]  ;;  %v3075_v51 = vld [vmem:[#allocation3 + $0xf4] sm:$0xf0] }
 0x1bb   :  { %981 = vmatmul.bf16.gmra.mxu2 %v2743_v36  ;;  %v1426_v36 = vunpack.c.h.b16 %v608_v24  ;;  %v3076_v41 = vld [vmem:[#allocation6 + $0x4] sm:$0xf]  ;;  %v2824_v44 = vld [vmem:[#allocation6 + $0x8] sm:$0xf0]  ;;  %v2699_v50 = vor.u32 %v3044_v37, %v2696_v38  ;;  %v3067_v24 = vld [vmem:[#allocation3 + $0xb4] sm:$0xf0] }
 0x1bc   :  { %1032 = vmatpush.bf16.msra.mxu3 %v926_v46  ;;  %1562 = vmatpush.bf16.msrb.mxu1 %v1456_v49  ;;  %v3061_v46 = vld [vmem:[#allocation3 + $0x84] sm:$0xf0]  ;;  %v2827_v42 = vor.u32 %v3076_v41, %v2824_v44  ;;  %v2783_v28 = vor.u32 %v3067_v24, %v2782_v53  ;;  %v3058_v53 = vld [vmem:[#allocation3 + $0x74] sm:$0xf]  ;;  %v2752_v24 = vld [vmem:[#allocation3 + $0x78] sm:$0xf0] }
 0x1bd   :  { %v1449_v49 = vpack.c.b16 %v1426_v36, %v1425_v40  ;;  %v2759_v43 = vor.u32 %v3061_v46, %v2758_v45  ;;  %v2790_v36 = vld [vmem:[#allocation3 + $0xc0] sm:$0xf]  ;;  %v3069_v37 = vld [vmem:[#allocation3 + $0xc4] sm:$0xf0] }
 0x1be   :  { %v2791_v41 = vor.u32 %v3069_v37, %v2790_v36  ;;  %v2870_v45 = vld [vmem:[#allocation6 + $0x60] sm:$0xf]  ;;  %v3089_v46 = vld [vmem:[#allocation6 + $0x64] sm:$0xf0] }
 0x1bf   :  { %v3109_v36 = vld [vmem:[#allocation11 + $0x8] sm:$0xff] }
 0x1c0   :  { %1033 = vmatpush.bf16.msra.mxu3 %v925_v54  ;;  %1563 = vmatpush.bf16.msrb.mxu1 %v1455_v55  ;;  %v3046_v54 = vld [vmem:[#allocation3 + $0x14] sm:$0xf]  ;;  %v2704_v55 = vld [vmem:[#allocation3 + $0x18] sm:$0xf0] }
 0x1c1   :  { %v2707_v62 = vor.u32 %v3046_v54, %v2704_v55 }
 0x1c4   :  { %1034 = vmatpush.bf16.msra.mxu3 %v924_v6  ;;  %1564 = vmatpush.bf16.msrb.mxu1 %v1454_v7  ;;  %v2846_v7 = vld [vmem:[#allocation6 + $0x30] sm:$0xf] }
 0x1c5   :  { %v2847_v9 = vor.u32 %v3083_v8, %v2846_v7  ;;  %v3056_v7 = vld [vmem:[#allocation3 + $0x64] sm:$0xf]  ;;  %v2744_v8 = vld [vmem:[#allocation3 + $0x68] sm:$0xf0] }
 0x1c7   :  { %1496 = vmatmul.bf16.gmra.mxu0 %v2847_v9  ;;  %v3088_v9 = vld [vmem:[#allocation6 + $0x64] sm:$0xf] }
 0x1c8   :  { %1035 = vmatpush.bf16.msra.mxu3 %v923_v13  ;;  %1565 = vmatpush.bf16.msrb.mxu1 %v1453_v14  ;;  %v3065_v13 = vld [vmem:[#allocation3 + $0xa4] sm:$0xf0] }
 0x1cb   :  { %986 = vmatmul.bf16.gmra.mxu2 %v2751_v59  ;;  %v2775_v59 = vor.u32 %v3065_v13, %v2774_v12  ;;  %v3073_v12 = vld [vmem:[#allocation3 + $0xe4] sm:$0xf0]  ;;  %v2747_v13 = vor.u32 %v3056_v7, %v2744_v8  ;;  %v2902_v8 = vld [vmem:[#allocation6 + $0xa0] sm:$0xf] }
 0x1cc   :  { %1036 = vmatpush.bf16.msra.mxu3 %v922_v20  ;;  %1566 = vmatpush.bf16.msrb.mxu1 %v1452_v21  ;;  %v2855_v20 = vor.u32 %v3085_v63, %v2854_v19  ;;  %v3050_v21 = vld [vmem:[#allocation3 + $0x34] sm:$0xf]  ;;  %v3112_v19 = vld [vmem:[#allocation11 + $0x20] sm:$0xff] }
 0x1d0   :  { %1037 = vmatpush.bf16.msra.mxu3 %v921_v57  ;;  %1567 = vmatpush.bf16.msrb.mxu1 %v1451_v26  ;;  %v2723_v26 = vor.u32 %v3050_v21, %v2720_v22  ;;  %v2886_v21 = vld [vmem:[#allocation6 + $0x80] sm:$0xf]  ;;  %v3093_v22 = vld [vmem:[#allocation6 + $0x84] sm:$0xf0] }
 0x1d1   :  { %v2887_v23 = vor.u32 %v3093_v22, %v2886_v21  ;;  %v2896_v21 = vld [vmem:[#allocation6 + $0x98] sm:$0xf0] }
 0x1d4   :  { %1038 = vmatpush.bf16.msra.mxu3 %v920_v52  ;;  %1568 = vmatpush.bf16.msrb.mxu1 %v1450_v34  ;;  %v2728_v52 = vld [vmem:[#allocation3 + $0x48] sm:$0xf0]  ;;  %v3084_v34 = vld [vmem:[#allocation6 + $0x44] sm:$0xf] }
 0x1d5   :  { %v2731_v40 = vor.u32 %v3052_v33, %v2728_v52  ;;  %v2859_v38 = vor.u32 %v3084_v34, %v2856_v35  ;;  %v3110_v33 = vld [vmem:[#allocation11 + $0x10] sm:$0xff]  ;;  %v2755_v52 = vor.u32 %v3058_v53, %v2752_v24  ;;  %v2815_v35 = vor.u32 %v3075_v51, %v2814_v47 }
 0x1d7   :  { %1501 = vmatmul.bf16.gmra.mxu0 %v2855_v20 }
 0x1d8   :  { %1039 = vmatpush.bf16.msra.mxu3 %v919_v48  ;;  %1569 = vmatpush.bf16.msrb.mxu1 %v1449_v49  ;;  %v2871_v48 = vor.u32 %v3089_v46, %v2870_v45  ;;  %v3054_v49 = vld [vmem:[#allocation3 + $0x54] sm:$0xf]  ;;  %v3095_v45 = vld [vmem:[#allocation6 + $0x94] sm:$0xf0] }
 0x1db   :  { %1040 = vmatmul.bf16.vlgmr.msra.gmra.mxu3 %v2699_v50  ;;  %1570 = vmatmul.bf16.vlgmr.msrb.gmra.mxu1 %v2827_v42  ;;  %v2736_v50 = vld [vmem:[#allocation3 + $0x58] sm:$0xf0]  ;;  %v3086_v42 = vld [vmem:[#allocation6 + $0x54] sm:$0xf] }
 0x1dc   :  { %991 = vmatmul.bf16.gmra.mxu2 %v2759_v43  ;;  %v2864_v43 = vld [vmem:[#allocation6 + $0x58] sm:$0xf0]  ;;  %v2739_v54 = vor.u32 %v3054_v49, %v2736_v50  ;;  %2325 = vmatpush.bf16.msrb.mxu3 %v3123_v58  ;;  %v3122_v49 = vld [vmem:[#allocation12 + $0x30] sm:$0xff]  ;;  %v2760_v50 = vld [vmem:[#allocation3 + $0x88] sm:$0xf0] }
 0x1dd   :  { %v2867_v55 = vor.u32 %v3086_v42, %v2864_v43  ;;  %v3092_v42 = vld [vmem:[#allocation6 + $0x84] sm:$0xf]  ;;  %v2888_v43 = vld [vmem:[#allocation6 + $0x88] sm:$0xf0] }
 0x1de   :  { %v3463_v29 = vpop.f32.mrf.mxu2 }
 0x1e0   :  { %2326 = vmatpush.bf16.msrb.mxu3 %v3122_v49 }
 0x1e6   :  { %v3465_v61 = vpop.f32.mrf.mxu2 }
 0x1e7   :  { %1506 = vmatmul.bf16.gmra.mxu0 %v2863_v32 }
 0x1eb   :  { %1045 = vmatmul.bf16.gmra.mxu3 %v2707_v62  ;;  %1575 = vmatmul.bf16.gmra.mxu1 %v2835_v1  ;;  %v2878_v62 = vld [vmem:[#allocation6 + $0x70] sm:$0xf]  ;;  %v3091_v1 = vld [vmem:[#allocation6 + $0x74] sm:$0xf0] }
 0x1ec   :  { %996 = vmatmul.bf16.gmra.mxu2 %v2767_v2  ;;  %v2879_v2 = vor.u32 %v3091_v1, %v2878_v62  ;;  %v3498_v62 = vperm.slane %v1782_v4, 0 }
 0x1ee   :  { %v3467_v6 = vpop.f32.mrf.mxu2 }
 0x1f6   :  { %v3469_v14 = vpop.f32.mrf.mxu2 }
 0x1f7   :  { %1511 = vmatmul.bf16.gmra.mxu0 %v2871_v48  ;;  %v3060_v48 = vld [vmem:[#allocation3 + $0x84] sm:$0xf] }
 0x1fb   :  { %1050 = vmatmul.bf16.gmra.mxu3 %v2715_v15  ;;  %1580 = vmatmul.bf16.gmra.mxu1 %v2843_v3  ;;  %v2875_v15 = vor.u32 %v3088_v9, %v2872_v0  ;;  %v2807_v3 = vor.u32 %v3073_v12, %v2806_v11  ;;  %v3097_v9 = vld [vmem:[#allocation6 + $0xa4] sm:$0xf0] }
 0x1fc   :  { %1001 = vmatmul.bf16.gmra.mxu2 %v2775_v59  ;;  %v3113_v59 = vld [vmem:[#allocation11 + $0x28] sm:$0xff]  ;;  %v2903_v11 = vor.u32 %v3097_v9, %v2902_v8  ;;  %v3064_v8 = vld [vmem:[#allocation3 + $0xa4] sm:$0xf] }
 0x1fd   :  { %2110 = vmatpush.bf16.msrb.mxu2 %v3113_v59  ;;  %v1482_v20 = vpop.f32.mrf.mxu0  ;;  %v3062_v59 = vld [vmem:[#allocation3 + $0x94] sm:$0xf]  ;;  %v3121_v9 = vld [vmem:[#allocation12 + $0x28] sm:$0xff] }
 0x1fe   :  { %v3471_v18 = vpop.f32.mrf.mxu2  ;;  %2327 = vmatpush.bf16.msrb.mxu3 %v3121_v9 }
 0x201   :  { %2111 = vmatpush.bf16.msrb.mxu2 %v3112_v19  ;;  %v2768_v19 = vld [vmem:[#allocation3 + $0x98] sm:$0xf0] }
 0x205   :  { %2112 = vmatpush.bf16.msrb.mxu2 %v3111_v30  ;;  %v1484_v32 = vpop.f32.mrf.mxu0 }
 0x206   :  { %v3473_v57 = vpop.f32.mrf.mxu2 }
 0x207   :  { %1516 = vmatmul.bf16.gmra.mxu0 %v2879_v2  ;;  %v3500_v2 = vperm.slane %v1782_v4, 1 }
 0x209   :  { %2113 = vmatpush.bf16.msrb.mxu2 %v3110_v33 }
 0x20b   :  { %1055 = vmatmul.bf16.gmra.mxu3 %v2723_v26  ;;  %1585 = vmatmul.bf16.gmra.mxu1 %v2851_v27  ;;  %v3090_v26 = vld [vmem:[#allocation6 + $0x74] sm:$0xf]  ;;  %v2880_v27 = vld [vmem:[#allocation6 + $0x78] sm:$0xf0] }
 0x20c   :  { %1006 = vmatmul.bf16.gmra.mxu2 %v2783_v28  ;;  %v2883_v34 = vor.u32 %v3090_v26, %v2880_v27  ;;  %v2771_v26 = vor.u32 %v3062_v59, %v2768_v19 }
 0x20d   :  { %2114 = vmatpush.bf16.msrb.mxu2 %v3109_v36 }
 0x20e   :  { %v3475_v31 = vpop.f32.mrf.mxu2 }
 0x216   :  { %v3477_v39 = vpop.f32.mrf.mxu2 }
 0x217   :  { %1521 = vmatmul.bf16.gmra.mxu0 %v2887_v23 }
 0x21b   :  { %1060 = vmatmul.bf16.gmra.mxu3 %v2731_v40  ;;  %1590 = vmatmul.bf16.gmra.mxu1 %v2859_v38  ;;  %v1487_v40 = vpop.f32.mrf.mxu0  ;;  %v3108_v38 = vld [vmem:[#allocation11] sm:$0xff] }
 0x21c   :  { %1011 = vmatmul.bf16.gmra.mxu2 %v2791_v41  ;;  %v2894_v41 = vld [vmem:[#allocation6 + $0x90] sm:$0xf] }
 0x21d   :  { %v2895_v46 = vor.u32 %v3095_v45, %v2894_v41  ;;  %2115 = vmatpush.bf16.msrb.mxu2 %v3108_v38 }
 0x21e   :  { %v3479_v44 = vpop.f32.mrf.mxu2 }
 0x223   :  { %v1489_v16 = vpop.f32.mrf.mxu0 }
 0x226   :  { %v3481_v17 = vpop.f32.mrf.mxu2 }
 0x227   :  { %1526 = vmatmul.bf16.gmra.mxu0 %v2895_v46 }
 0x22b   :  { %1065 = vmatmul.bf16.gmra.mxu3 %v2739_v54  ;;  %1595 = vmatmul.bf16.gmra.mxu1 %v2867_v55  ;;  %v2763_v54 = vor.u32 %v3060_v48, %v2760_v50  ;;  %v2891_v55 = vor.u32 %v3092_v42, %v2888_v43  ;;  %v3099_v48 = vld [vmem:[#allocation6 + $0xb4] sm:$0xf0] }
 0x22c   :  { %1016 = vmatmul.bf16.gmra.mxu2 %v2799_v56 }
 0x22e   :  { %v3483_v60 = vpop.f32.mrf.mxu2 }
 0x230   :  { %v3502_v7 = vpop.f32.mrf.mxu0 }
 0x236   :  { %v3485_v10 = vpop.f32.mrf.mxu2 }
 0x237   :  { %1531 = vmatmul.bf16.gmra.mxu0 %v2903_v11  ;;  %v2904_v11 = vld [vmem:[#allocation6 + $0xa8] sm:$0xf0] }
 0x23b   :  { %1070 = vmatmul.bf16.gmra.mxu3 %v2747_v13  ;;  %1600 = vmatmul.bf16.gmra.mxu1 %v2875_v15 }
 0x23c   :  { %1021 = vmatmul.bf16.gmra.mxu2 %v2807_v3 }
 0x23e   :  { %v3487_v63 = vpop.f32.mrf.mxu2 }
 0x246   :  { %v3489_v28 = vpop.f32.mrf.mxu2 }
 0x24b   :  { %1075 = vmatmul.bf16.gmra.mxu3 %v2755_v52  ;;  %1605 = vmatmul.bf16.gmra.mxu1 %v2883_v34 }
 0x24c   :  { %1026 = vmatmul.bf16.gmra.mxu2 %v2815_v35 }
 0x24e   :  { %v3491_v37 = vpop.f32.mrf.mxu2 }
 0x256   :  { %v3493_v25 = vpop.f32.mrf.mxu2 }
 0x258   :  { %v1571_v56 = vpop.f32.mrf.mxu1 }
 0x259   :  { %v1572_v1 = vadd.f32 %v1571_v56, %v1482_v20  ;;  %v3094_v20 = vld [vmem:[#allocation6 + $0x94] sm:$0xf] }
 0x25a   :  { %v2899_v27 = vor.u32 %v3094_v20, %v2896_v21 }
 0x25b   :  { %1080 = vmatmul.bf16.gmra.mxu3 %v2763_v54  ;;  %1610 = vmatmul.bf16.gmra.mxu1 %v2891_v55  ;;  %v1789_v3 = vadd.f32 %v3500_v2, %v1572_v1 }
 0x25d   :  { %v1853_v53 = vmax.f32 %v1789_v3, 0.0 }
 0x25e   :  { %v1041_v58 = vpop.f32.mrf.mxu3 }
 0x25f   :  { %v1042_v0 = vadd.f32 %v1041_v58, %v3463_v29  ;;  %v3505_v5 = vpop.f32.mrf.mxu2  ;;  %v3510_v29 = vpop.f32.mrf.mxu0 }
 0x260   :  { %v1573_v12 = vpop.f32.mrf.mxu1 }
 0x261   :  { %v1574_v13 = vadd.f32 %v1573_v12, %v1484_v32  ;;  %v1788_v15 = vadd.f32 %v3498_v62, %v1042_v0  ;;  %v2776_v0 = vld [vmem:[#allocation3 + $0xa8] sm:$0xf0] }
 0x262   :  { %v2779_v19 = vor.u32 %v3064_v8, %v2776_v0 }
 0x263   :  { %v1791_v22 = vadd.f32 %v3500_v2, %v1574_v13  ;;  %v1852_v23 = vmax.f32 %v1788_v15, 0.0 }
 0x265   :  { %v1855_v33 = vmax.f32 %v1791_v22, 0.0  ;;  %v1916_v52 = vpack.c.bf16 %v1853_v53, %v1852_v23 }
 0x266   :  { %v1043_v30 = vpop.f32.mrf.mxu3 }
 0x267   :  { %v1044_v24 = vadd.f32 %v1043_v30, %v3465_v61  ;;  %v3513_v47 = vpop.f32.mrf.mxu2  ;;  %v1996_v38 = vunpack.c.l.b16 %v1916_v52  ;;  %v2213_v41 = vunpack.c.h.b16 %v1916_v52  ;;  %v3516_v46 = vpop.f32.mrf.mxu0  ;;  %v2910_v61 = vld [vmem:[#allocation6 + $0xb0] sm:$0xf] }
 0x268   :  { %v1576_v51 = vpop.f32.mrf.mxu1  ;;  %v2911_v54 = vor.u32 %v3099_v48, %v2910_v61 }
 0x269   :  { %v1790_v32 = vadd.f32 %v3498_v62, %v1044_v24  ;;  %v1577_v45 = vadd.f32 %v1576_v51, %v1487_v40 }
 0x26a   :  { %1536 = vmatmul.bf16.gmra.mxu0 %v2911_v54  ;;  %v3066_v54 = vld [vmem:[#allocation3 + $0xb4] sm:$0xf] }
 0x26b   :  { %v1854_v34 = vmax.f32 %v1790_v32, 0.0  ;;  %1085 = vmatmul.bf16.gmra.mxu3 %v2771_v26  ;;  %1615 = vmatmul.bf16.gmra.mxu1 %v2899_v27  ;;  %v1793_v40 = vadd.f32 %v3500_v2, %v1577_v45 }
 0x26d   :  { %v1917_v35 = vpack.c.bf16 %v1855_v33, %v1854_v34  ;;  %v1857_v3 = vmax.f32 %v1793_v40, 0.0  ;;  %v3101_v34 = vld [vmem:[#allocation6 + $0xc4] sm:$0xf0] }
 0x26e   :  { %v1046_v36 = vpop.f32.mrf.mxu3 }
 0x26f   :  { %v1047_v49 = vadd.f32 %v1046_v36, %v3467_v6  ;;  %v1997_v50 = vunpack.c.l.b16 %v1917_v35  ;;  %v2214_v42 = vunpack.c.h.b16 %v1917_v35  ;;  %v3519_v43 = vpop.f32.mrf.mxu2  ;;  %v3096_v6 = vld [vmem:[#allocation6 + $0xa4] sm:$0xf] }
 0x270   :  { %v1578_v55 = vpop.f32.mrf.mxu1  ;;  %v2907_v20 = vor.u32 %v3096_v6, %v2904_v11 }
 0x271   :  { %v2028_v56 = vpack.c.b16 %v1997_v50, %v1996_v38  ;;  %v1579_v4 = vadd.f32 %v1578_v55, %v1489_v16  ;;  %v3521_v58 = vpack.c.b16 %v2214_v42, %v2213_v41  ;;  %v1792_v1 = vadd.f32 %v3498_v62, %v1047_v49  ;;  %v3526_v16 = vpop.f32.mrf.mxu0  ;;  %v2784_v55 = vld [vmem:[#allocation3 + $0xb8] sm:$0xf0] }
 0x272   :  { %v2787_v0 = vor.u32 %v3066_v54, %v2784_v55 }
 0x273   :  { %2116 = vmatmul.bf16.vlgmr.msrb.gmra.mxu2 %v2028_v56  ;;  %v1795_v12 = vadd.f32 %v3500_v2, %v1579_v4  ;;  %v1856_v13 = vmax.f32 %v1792_v1, 0.0  ;;  %v2912_v56 = vld [vmem:[#allocation6 + $0xb8] sm:$0xf0] }
 0x275   :  { %v1859_v30 = vmax.f32 %v1795_v12, 0.0  ;;  %v1918_v53 = vpack.c.bf16 %v1857_v3, %v1856_v13 }
 0x276   :  { %v1048_v15 = vpop.f32.mrf.mxu3 }
 0x277   :  { %v1049_v59 = vadd.f32 %v1048_v15, %v3469_v14  ;;  %v3529_v21 = vpop.f32.mrf.mxu2  ;;  %v1998_v32 = vunpack.c.l.b16 %v1918_v53  ;;  %v2215_v33 = vunpack.c.h.b16 %v1918_v53  ;;  %v2918_v14 = vld [vmem:[#allocation6 + $0xc0] sm:$0xf] }
 0x278   :  { %v1581_v22 = vpop.f32.mrf.mxu1  ;;  %v2919_v45 = vor.u32 %v3101_v34, %v2918_v14 }
 0x279   :  { %v1794_v23 = vadd.f32 %v3498_v62, %v1049_v59  ;;  %v1582_v51 = vadd.f32 %v1581_v22, %v3502_v7  ;;  %v3533_v52 = vpop.f32.mrf.mxu0 }
 0x27a   :  { %1541 = vmatmul.bf16.gmra.mxu0 %v2919_v45  ;;  %v3068_v45 = vld [vmem:[#allocation3 + $0xc4] sm:$0xf] }
 0x27b   :  { %v1858_v24 = vmax.f32 %v1794_v23, 0.0  ;;  %1090 = vmatmul.bf16.gmra.mxu3 %v2779_v19  ;;  %1620 = vmatmul.bf16.gmra.mxu1 %v2907_v20  ;;  %v1797_v42 = vadd.f32 %v3500_v2, %v1582_v51 }
 0x27d   :  { %v1919_v26 = vpack.c.bf16 %v1859_v30, %v1858_v24  ;;  %v1861_v8 = vmax.f32 %v1797_v42, 0.0  ;;  %v3103_v24 = vld [vmem:[#allocation6 + $0xd4] sm:$0xf0] }
 0x27e   :  { %v1051_v27 = vpop.f32.mrf.mxu3 }
 0x27f   :  { %v1052_v35 = vadd.f32 %v1051_v27, %v3471_v18  ;;  %v1999_v36 = vunpack.c.l.b16 %v1919_v26  ;;  %v2216_v38 = vunpack.c.h.b16 %v1919_v26  ;;  %v3536_v41 = vpop.f32.mrf.mxu2  ;;  %v3098_v18 = vld [vmem:[#allocation6 + $0xb4] sm:$0xf] }
 0x280   :  { %v1583_v61 = vpop.f32.mrf.mxu1  ;;  %v2915_v6 = vor.u32 %v3098_v18, %v2912_v56 }
 0x281   :  { %v2029_v48 = vpack.c.b16 %v1999_v36, %v1998_v32  ;;  %v1584_v49 = vadd.f32 %v1583_v61, %v3510_v29  ;;  %v3539_v50 = vpack.c.b16 %v2216_v38, %v2215_v33  ;;  %v1796_v7 = vadd.f32 %v3498_v62, %v1052_v35  ;;  %v3544_v9 = vpop.f32.mrf.mxu0  ;;  %v3120_v61 = vld [vmem:[#allocation12 + $0x20] sm:$0xff] }
 0x282   :  { %2328 = vmatpush.bf16.msrb.mxu3 %v3120_v61 }
 0x283   :  { %2121 = vmatmul.bf16.gmra.mxu2 %v2029_v48  ;;  %v1799_v4 = vadd.f32 %v3500_v2, %v1584_v49  ;;  %v1860_v1 = vmax.f32 %v1796_v7, 0.0  ;;  %v3100_v48 = vld [vmem:[#allocation6 + $0xc4] sm:$0xf]  ;;  %v2920_v49 = vld [vmem:[#allocation6 + $0xc8] sm:$0xf0] }
 0x285   :  { %v1863_v15 = vmax.f32 %v1799_v4, 0.0  ;;  %v1920_v3 = vpack.c.bf16 %v1861_v8, %v1860_v1  ;;  %v2923_v4 = vor.u32 %v3100_v48, %v2920_v49 }
 0x286   :  { %v1053_v40 = vpop.f32.mrf.mxu3 }
 0x287   :  { %v1054_v29 = vadd.f32 %v1053_v40, %v3473_v57  ;;  %v3547_v11 = vpop.f32.mrf.mxu2  ;;  %v2000_v23 = vunpack.c.l.b16 %v1920_v3  ;;  %v2217_v30 = vunpack.c.h.b16 %v1920_v3  ;;  %v2926_v57 = vld [vmem:[#allocation6 + $0xd0] sm:$0xf] }
 0x288   :  { %v1586_v12 = vpop.f32.mrf.mxu1  ;;  %v2927_v32 = vor.u32 %v3103_v24, %v2926_v57 }
 0x289   :  { %v1798_v13 = vadd.f32 %v3498_v62, %v1054_v29  ;;  %v1587_v22 = vadd.f32 %v1586_v12, %v3516_v46  ;;  %v3551_v53 = vpop.f32.mrf.mxu0 }
 0x28a   :  { %1546 = vmatmul.bf16.gmra.mxu0 %v2927_v32 }
 0x28b   :  { %v1862_v59 = vmax.f32 %v1798_v13, 0.0  ;;  %1095 = vmatmul.bf16.gmra.mxu3 %v2787_v0  ;;  %1625 = vmatmul.bf16.gmra.mxu1 %v2915_v6  ;;  %v1801_v38 = vadd.f32 %v3500_v2, %v1587_v22 }
 0x28d   :  { %v1921_v19 = vpack.c.bf16 %v1863_v15, %v1862_v59  ;;  %v1865_v54 = vmax.f32 %v1801_v38, 0.0 }
 0x28e   :  { %v1056_v20 = vpop.f32.mrf.mxu3 }
 0x28f   :  { %v1057_v26 = vadd.f32 %v1056_v20, %v3475_v31  ;;  %v2001_v27 = vunpack.c.l.b16 %v1921_v19  ;;  %v2218_v51 = vunpack.c.h.b16 %v1921_v19  ;;  %v3557_v36 = vpop.f32.mrf.mxu2  ;;  %v2792_v31 = vld [vmem:[#allocation3 + $0xc8] sm:$0xf0]  ;;  %v3105_v20 = vld [vmem:[#allocation6 + $0xe4] sm:$0xf0] }
 0x290   :  { %v1588_v33 = vpop.f32.mrf.mxu1  ;;  %v2795_v56 = vor.u32 %v3068_v45, %v2792_v31 }
 0x291   :  { %v2030_v14 = vpack.c.b16 %v2001_v27, %v2000_v23  ;;  %v1589_v34 = vadd.f32 %v1588_v33, %v3526_v16  ;;  %v3555_v35 = vpack.c.b16 %v2218_v51, %v2217_v30  ;;  %v1800_v46 = vadd.f32 %v3498_v62, %v1057_v26  ;;  %v3562_v55 = vpop.f32.mrf.mxu0  ;;  %v3070_v33 = vld [vmem:[#allocation3 + $0xd4] sm:$0xf] }
 0x293   :  { %2126 = vmatmul.bf16.gmra.mxu2 %v2030_v14  ;;  %v1803_v7 = vadd.f32 %v3500_v2, %v1589_v34  ;;  %v1864_v42 = vmax.f32 %v1800_v46, 0.0  ;;  %v2800_v14 = vld [vmem:[#allocation3 + $0xd8] sm:$0xf0]  ;;  %v3102_v34 = vld [vmem:[#allocation6 + $0xd4] sm:$0xf] }
 0x294   :  { %v2928_v46 = vld [vmem:[#allocation6 + $0xd8] sm:$0xf0]  ;;  %v2803_v49 = vor.u32 %v3070_v33, %v2800_v14  ;;  %v2936_v33 = vld [vmem:[#allocation6 + $0xe8] sm:$0xf0] }
 0x295   :  { %v1867_v8 = vmax.f32 %v1803_v7, 0.0  ;;  %v1922_v29 = vpack.c.bf16 %v1865_v54, %v1864_v42  ;;  %v2931_v7 = vor.u32 %v3102_v34, %v2928_v46 }
 0x296   :  { %v1058_v16 = vpop.f32.mrf.mxu3 }
 0x297   :  { %v1059_v18 = vadd.f32 %v1058_v16, %v3477_v39  ;;  %v3566_v6 = vpop.f32.mrf.mxu2  ;;  %v2002_v3 = vunpack.c.l.b16 %v1922_v29  ;;  %v2219_v59 = vunpack.c.h.b16 %v1922_v29  ;;  %v2934_v39 = vld [vmem:[#allocation6 + $0xe0] sm:$0xf] }
 0x298   :  { %v1591_v1 = vpop.f32.mrf.mxu1  ;;  %v2935_v57 = vor.u32 %v3105_v20, %v2934_v39 }
 0x299   :  { %v1802_v40 = vadd.f32 %v3498_v62, %v1059_v18  ;;  %v1592_v15 = vadd.f32 %v1591_v1, %v3533_v52  ;;  %v3569_v19 = vpop.f32.mrf.mxu0  ;;  %v3119_v18 = vld [vmem:[#allocation12 + $0x18] sm:$0xff] }
 0x29a   :  { %1551 = vmatmul.bf16.gmra.mxu0 %v2935_v57  ;;  %2329 = vmatpush.bf16.msrb.mxu3 %v3119_v18 }
 0x29b   :  { %v1866_v0 = vmax.f32 %v1802_v40, 0.0  ;;  %1100 = vmatmul.bf16.gmra.mxu3 %v2795_v56  ;;  %1630 = vmatmul.bf16.gmra.mxu1 %v2923_v4  ;;  %v1805_v52 = vadd.f32 %v3500_v2, %v1592_v15  ;;  %v3107_v15 = vld [vmem:[#allocation6 + $0xf4] sm:$0xf0] }
 0x29d   :  { %v1923_v12 = vpack.c.bf16 %v1867_v8, %v1866_v0  ;;  %v1869_v31 = vmax.f32 %v1805_v52, 0.0  ;;  %v3118_v8 = vld [vmem:[#allocation12 + $0x10] sm:$0xff]  ;;  %v3104_v52 = vld [vmem:[#allocation6 + $0xe4] sm:$0xf] }
 0x29e   :  { %v1061_v13 = vpop.f32.mrf.mxu3  ;;  %2330 = vmatpush.bf16.msrb.mxu3 %v3118_v8 }
 0x29f   :  { %v1062_v22 = vadd.f32 %v1061_v13, %v3479_v44  ;;  %v2003_v23 = vunpack.c.l.b16 %v1923_v12  ;;  %v2220_v30 = vunpack.c.h.b16 %v1923_v12  ;;  %v3578_v38 = vpop.f32.mrf.mxu2  ;;  %v2942_v13 = vld [vmem:[#allocation6 + $0xf0] sm:$0xf] }
 0x2a0   :  { %v1593_v24 = vpop.f32.mrf.mxu1  ;;  %v2943_v20 = vor.u32 %v3107_v15, %v2942_v13 }
 0x2a1   :  { %v2031_v26 = vpack.c.b16 %v2003_v23, %v2002_v3  ;;  %v1594_v27 = vadd.f32 %v1593_v24, %v3544_v9  ;;  %v3573_v51 = vpack.c.b16 %v2220_v30, %v2219_v59  ;;  %v1804_v32 = vadd.f32 %v3498_v62, %v1062_v22  ;;  %v3580_v9 = vpop.f32.mrf.mxu0 }
 0x2a3   :  { %2131 = vmatmul.bf16.gmra.mxu2 %v2031_v26  ;;  %v1807_v44 = vadd.f32 %v3500_v2, %v1594_v27  ;;  %v1868_v45 = vmax.f32 %v1804_v32, 0.0  ;;  %v3117_v26 = vld [vmem:[#allocation12 + $0x8] sm:$0xff]  ;;  %v3072_v32 = vld [vmem:[#allocation3 + $0xe4] sm:$0xf] }
 0x2a4   :  { %2331 = vmatpush.bf16.msrb.mxu3 %v3117_v26 }
 0x2a5   :  { %v1871_v54 = vmax.f32 %v1807_v44, 0.0  ;;  %v1924_v56 = vpack.c.bf16 %v1869_v31, %v1868_v45  ;;  %v3116_v44 = vld [vmem:[#allocation12] sm:$0xff] }
 0x2a6   :  { %v1063_v61 = vpop.f32.mrf.mxu3 }
 0x2a7   :  { %v1064_v48 = vadd.f32 %v1063_v61, %v3481_v17  ;;  %v2004_v0 = vunpack.c.l.b16 %v1924_v56  ;;  %v2221_v12 = vunpack.c.h.b16 %v1924_v56  ;;  %v3588_v23 = vpop.f32.mrf.mxu2 }
 0x2a8   :  { %v1596_v42 = vpop.f32.mrf.mxu1  ;;  %2332 = vmatpush.bf16.msrb.mxu3 %v3116_v44 }
 0x2a9   :  { %v1806_v16 = vadd.f32 %v3498_v62, %v1064_v48  ;;  %v1597_v29 = vadd.f32 %v1596_v42, %v3551_v53  ;;  %v3585_v17 = vpop.f32.mrf.mxu0  ;;  %v2939_v48 = vor.u32 %v3104_v52, %v2936_v33 }
 0x2aa   :  { %1556 = vmatmul.bf16.gmra.mxu0 %v2943_v20 }
 0x2ab   :  { %v1870_v4 = vmax.f32 %v1806_v16, 0.0  ;;  %1105 = vmatmul.bf16.gmra.mxu3 %v2803_v49  ;;  %1635 = vmatmul.bf16.gmra.mxu1 %v2931_v7  ;;  %v1809_v27 = vadd.f32 %v3500_v2, %v1597_v29 }
 0x2ad   :  { %v1925_v1 = vpack.c.bf16 %v1871_v54, %v1870_v4 }
 0x2ae   :  { %v1066_v40 = vpop.f32.mrf.mxu3 }
 0x2af   :  { %v1067_v3 = vadd.f32 %v1066_v40, %v3483_v60  ;;  %v2005_v59 = vunpack.c.l.b16 %v1925_v1  ;;  %v2222_v39 = vunpack.c.h.b16 %v1925_v1  ;;  %v2808_v60 = vld [vmem:[#allocation3 + $0xe8] sm:$0xf0]  ;;  %v3598_v54 = vpop.f32.mrf.mxu2 }
 0x2b0   :  { %v1598_v22 = vpop.f32.mrf.mxu1  ;;  %v2811_v31 = vor.u32 %v3072_v32, %v2808_v60 }
 0x2b1   :  { %v2032_v30 = vpack.c.b16 %v2005_v59, %v2004_v0  ;;  %v1599_v57 = vadd.f32 %v1598_v22, %v3562_v55  ;;  %v3591_v24 = vpack.c.b16 %v2222_v39, %v2221_v12  ;;  %v1808_v53 = vadd.f32 %v3498_v62, %v1067_v3  ;;  %v1519_v45 = vpop.f32.mrf.mxu0  ;;  %v3074_v22 = vld [vmem:[#allocation3 + $0xf4] sm:$0xf] }
 0x2b2   :  { %v1873_v55 = vmax.f32 %v1809_v27, 0.0 }
 0x2b3   :  { %2136 = vmatmul.bf16.gmra.mxu2 %v2032_v30  ;;  %v1811_v14 = vadd.f32 %v3500_v2, %v1599_v57  ;;  %v1872_v34 = vmax.f32 %v1808_v53, 0.0  ;;  %v2944_v57 = vld [vmem:[#allocation6 + $0xf8] sm:$0xf0] }
 0x2b5   :  { %v1875_v42 = vmax.f32 %v1811_v14, 0.0  ;;  %v1926_v16 = vpack.c.bf16 %v1873_v55, %v1872_v34 }
 0x2b6   :  { %v1068_v46 = vpop.f32.mrf.mxu3 }
 0x2b7   :  { %v1069_v61 = vadd.f32 %v1068_v46, %v3485_v10  ;;  %v2006_v40 = vunpack.c.l.b16 %v1926_v16  ;;  %v2223_v29 = vunpack.c.h.b16 %v1926_v16  ;;  %v3607_v30 = vpop.f32.mrf.mxu2 }
 0x2b8   :  { %v1601_v49 = vpop.f32.mrf.mxu1 }
 0x2b9   :  { %v1810_v7 = vadd.f32 %v3498_v62, %v1069_v61  ;;  %v1602_v1 = vadd.f32 %v1601_v49, %v3569_v19  ;;  %v1522_v12 = vpop.f32.mrf.mxu0  ;;  %v2816_v19 = vld [vmem:[#allocation3 + $0xf8] sm:$0xf0] }
 0x2ba   :  { %v2819_v60 = vor.u32 %v3074_v22, %v2816_v19 }
 0x2bb   :  { %v1874_v18 = vmax.f32 %v1810_v7, 0.0  ;;  %1110 = vmatmul.bf16.gmra.mxu3 %v2811_v31  ;;  %1640 = vmatmul.bf16.gmra.mxu1 %v2939_v48  ;;  %v1813_v20 = vadd.f32 %v3500_v2, %v1602_v1 }
 0x2bd   :  { %v1927_v56 = vpack.c.bf16 %v1875_v42, %v1874_v18  ;;  %v1877_v32 = vmax.f32 %v1813_v20, 0.0 }
 0x2be   :  { %v1071_v4 = vpop.f32.mrf.mxu3 }
 0x2bf   :  { %v1072_v10 = vadd.f32 %v1071_v4, %v3487_v63  ;;  %v2007_v8 = vunpack.c.l.b16 %v1927_v56  ;;  %v2224_v0 = vunpack.c.h.b16 %v1927_v56  ;;  %v3106_v63 = vld [vmem:[#allocation6 + $0xf4] sm:$0xf]  ;;  %v3613_v7 = vpop.f32.mrf.mxu2 }
 0x2c0   :  { %v1603_v13 = vpop.f32.mrf.mxu1  ;;  %v2947_v52 = vor.u32 %v3106_v63, %v2944_v57 }
 0x2c1   :  { %v2033_v15 = vpack.c.b16 %v2007_v8, %v2006_v40  ;;  %v1604_v3 = vadd.f32 %v1603_v13, %v3580_v9  ;;  %v3603_v59 = vpack.c.b16 %v2224_v0, %v2223_v29  ;;  %v1812_v39 = vadd.f32 %v3498_v62, %v1072_v10  ;;  %v1524_v33 = vpop.f32.mrf.mxu0 }
 0x2c3   :  { %2141 = vmatmul.bf16.gmra.mxu2 %v2033_v15  ;;  %v1815_v53 = vadd.f32 %v3500_v2, %v1604_v3  ;;  %v1876_v26 = vmax.f32 %v1812_v39, 0.0 }
 0x2c5   :  { %v1879_v46 = vmax.f32 %v1815_v53, 0.0  ;;  %v1928_v44 = vpack.c.bf16 %v1877_v32, %v1876_v26 }
 0x2c6   :  { %v1073_v27 = vpop.f32.mrf.mxu3 }
 0x2c7   :  { %v1074_v9 = vadd.f32 %v1073_v27, %v3489_v28  ;;  %v2008_v49 = vunpack.c.l.b16 %v1928_v44  ;;  %v2225_v16 = vunpack.c.h.b16 %v1928_v44  ;;  %v3622_v39 = vpop.f32.mrf.mxu2 }
 0x2c8   :  { %v1606_v14 = vpop.f32.mrf.mxu1 }
 0x2c9   :  { %v1814_v34 = vadd.f32 %v3498_v62, %v1074_v9  ;;  %v1607_v48 = vadd.f32 %v1606_v14, %v3585_v17  ;;  %v1527_v56 = vpop.f32.mrf.mxu0 }
 0x2cb   :  { %v1878_v55 = vmax.f32 %v1814_v34, 0.0  ;;  %1115 = vmatmul.bf16.gmra.mxu3 %v2819_v60  ;;  %1645 = vmatmul.bf16.gmra.mxu1 %v2947_v52  ;;  %v1817_v29 = vadd.f32 %v3500_v2, %v1607_v48 }
 0x2cd   :  { %v1929_v61 = vpack.c.bf16 %v1879_v46, %v1878_v55  ;;  %v1881_v15 = vmax.f32 %v1817_v29, 0.0 }
 0x2ce   :  { %v1076_v31 = vpop.f32.mrf.mxu3 }
 0x2cf   :  { %v1077_v28 = vadd.f32 %v1076_v31, %v3491_v37  ;;  %v2009_v42 = vunpack.c.l.b16 %v1929_v61  ;;  %v2226_v18 = vunpack.c.h.b16 %v1929_v61 }
 0x2d0   :  { %v1608_v4 = vpop.f32.mrf.mxu1 }
 0x2d1   :  { %v2034_v1 = vpack.c.b16 %v2009_v42, %v2008_v49  ;;  %v1609_v40 = vadd.f32 %v1608_v4, %v1519_v45  ;;  %v3616_v10 = vpack.c.b16 %v2226_v18, %v2225_v16  ;;  %v1816_v8 = vadd.f32 %v3498_v62, %v1077_v28  ;;  %v1529_v3 = vpop.f32.mrf.mxu0 }
 0x2d3   :  { %2146 = vmatmul.bf16.gmra.mxu2 %v2034_v1  ;;  %v1819_v17 = vadd.f32 %v3500_v2, %v1609_v40  ;;  %v1880_v0 = vmax.f32 %v1816_v8, 0.0 }
 0x2d5   :  { %v1883_v22 = vmax.f32 %v1819_v17, 0.0  ;;  %v1930_v19 = vpack.c.bf16 %v1881_v15, %v1880_v0 }
 0x2d6   :  { %v1078_v13 = vpop.f32.mrf.mxu3 }
 0x2d7   :  { %v1079_v37 = vadd.f32 %v1078_v13, %v3493_v25  ;;  %v2010_v27 = vunpack.c.l.b16 %v1930_v19  ;;  %v2227_v60 = vunpack.c.h.b16 %v1930_v19 }
 0x2d8   :  { %v1611_v20 = vpop.f32.mrf.mxu1 }
 0x2d9   :  { %v1818_v45 = vadd.f32 %v3498_v62, %v1079_v37  ;;  %v1612_v26 = vadd.f32 %v1611_v20, %v1522_v12  ;;  %v1532_v52 = vpop.f32.mrf.mxu0 }
 0x2db   :  { %v1882_v63 = vmax.f32 %v1818_v45, 0.0  ;;  %2333 = vmatmul.bf16.vlgmr.msrb.gmra.mxu3 %v3521_v58  ;;  %v1821_v61 = vadd.f32 %v3500_v2, %v1612_v26  ;;  %v3631_v58 = vpop.f32.mrf.mxu2 }
 0x2dd   :  { %v1931_v57 = vpack.c.bf16 %v1883_v22, %v1882_v63  ;;  %v1885_v48 = vmax.f32 %v1821_v61, 0.0 }
 0x2de   :  { %v1081_v53 = vpop.f32.mrf.mxu3 }
 0x2df   :  { %v1082_v32 = vadd.f32 %v1081_v53, %v3505_v5  ;;  %v2011_v9 = vunpack.c.l.b16 %v1931_v57  ;;  %v2228_v25 = vunpack.c.h.b16 %v1931_v57 }
 0x2e0   :  { %v1613_v14 = vpop.f32.mrf.mxu1 }
 0x2e1   :  { %v2035_v34 = vpack.c.b16 %v2011_v9, %v2010_v27  ;;  %v1614_v46 = vadd.f32 %v1613_v14, %v1524_v33  ;;  %v3627_v44 = vpack.c.b16 %v2228_v25, %v2227_v60  ;;  %v1820_v55 = vadd.f32 %v3498_v62, %v1082_v32  ;;  %v1534_v16 = vpop.f32.mrf.mxu0 }
 0x2e3   :  { %2151 = vmatmul.bf16.gmra.mxu2 %v2035_v34  ;;  %v1823_v12 = vadd.f32 %v3500_v2, %v1614_v46  ;;  %v1884_v31 = vmax.f32 %v1820_v55, 0.0  ;;  %v3637_v1 = vpop.f32.mrf.mxu2 }
 0x2e5   :  { %v1887_v33 = vmax.f32 %v1823_v12, 0.0  ;;  %v1932_v18 = vpack.c.bf16 %v1885_v48, %v1884_v31 }
 0x2e6   :  { %v1083_v5 = vpop.f32.mrf.mxu3 }
 0x2e7   :  { %v1084_v49 = vadd.f32 %v1083_v5, %v3513_v47  ;;  %v2012_v17 = vunpack.c.l.b16 %v1932_v18  ;;  %v2229_v15 = vunpack.c.h.b16 %v1932_v18 }
 0x2e8   :  { %v1616_v28 = vpop.f32.mrf.mxu1 }
 0x2e9   :  { %v1822_v42 = vadd.f32 %v3498_v62, %v1084_v49  ;;  %v1617_v29 = vadd.f32 %v1616_v28, %v1527_v56  ;;  %v1537_v63 = vpop.f32.mrf.mxu0 }
 0x2eb   :  { %v1886_v4 = vmax.f32 %v1822_v42, 0.0  ;;  %2338 = vmatmul.bf16.gmra.mxu3 %v3539_v50  ;;  %v1825_v50 = vadd.f32 %v3500_v2, %v1617_v29 }
 0x2ed   :  { %v1933_v40 = vpack.c.bf16 %v1887_v33, %v1886_v4  ;;  %v1889_v26 = vmax.f32 %v1825_v50, 0.0 }
 0x2ee   :  { %v1086_v8 = vpop.f32.mrf.mxu3 }
 0x2ef   :  { %v1087_v0 = vadd.f32 %v1086_v8, %v3519_v43  ;;  %v2013_v13 = vunpack.c.l.b16 %v1933_v40  ;;  %v2230_v47 = vunpack.c.h.b16 %v1933_v40 }
 0x2f0   :  { %v1618_v37 = vpop.f32.mrf.mxu1 }
 0x2f1   :  { %v2036_v20 = vpack.c.b16 %v2013_v13, %v2012_v17  ;;  %v1619_v45 = vadd.f32 %v1618_v37, %v1529_v3  ;;  %v3640_v22 = vpack.c.b16 %v2230_v47, %v2229_v15  ;;  %v1824_v19 = vadd.f32 %v3498_v62, %v1087_v0  ;;  %v1539_v46 = vpop.f32.mrf.mxu0 }
 0x2f3   :  { %2156 = vmatmul.bf16.gmra.mxu2 %v2036_v20  ;;  %v1827_v57 = vadd.f32 %v3500_v2, %v1619_v45  ;;  %v1888_v56 = vmax.f32 %v1824_v19, 0.0 }
 0x2f5   :  { %v1891_v60 = vmax.f32 %v1827_v57, 0.0  ;;  %v1934_v25 = vpack.c.bf16 %v1889_v26, %v1888_v56 }
 0x2f6   :  { %v1088_v53 = vpop.f32.mrf.mxu3  ;;  %v2117_v43 = vpop.f32.mrf.mxu2 }
 0x2f7   :  { %v1089_v27 = vadd.f32 %v1088_v53, %v3529_v21  ;;  %v2414_v32 = vpack.c.bf16 %v2117_v43, %v2117_v43  ;;  %v2014_v31 = vunpack.c.l.b16 %v1934_v25  ;;  %v2231_v5 = vunpack.c.h.b16 %v1934_v25 }
 0x2f8   :  { %v1621_v9 = vpop.f32.mrf.mxu1 }
 0x2f9   :  { %v1826_v3 = vadd.f32 %v3498_v62, %v1089_v27  ;;  %2446 = vst [vmem:[#allocation14] sm:$0xf] %v2414_v32  ;;  %v1622_v61 = vadd.f32 %v1621_v9, %v1532_v52  ;;  %v1542_v15 = vpop.f32.mrf.mxu0 }
 0x2fb   :  { %v1890_v14 = vmax.f32 %v1826_v3, 0.0  ;;  %2343 = vmatmul.bf16.gmra.mxu3 %v3555_v35  ;;  %v1829_v40 = vadd.f32 %v3500_v2, %v1622_v61 }
 0x2fd   :  { %v1935_v34 = vpack.c.bf16 %v1891_v60, %v1890_v14  ;;  %v1893_v17 = vmax.f32 %v1829_v40, 0.0 }
 0x2fe   :  { %v1091_v55 = vpop.f32.mrf.mxu3  ;;  %v2119_v12 = vpop.f32.mrf.mxu2 }
 0x2ff   :  { %v1092_v48 = vadd.f32 %v1091_v55, %v3536_v41  ;;  %v2415_v21 = vpack.c.bf16 %v2119_v12, %v2119_v12  ;;  %v2015_v49 = vunpack.c.l.b16 %v1935_v34  ;;  %v2232_v28 = vunpack.c.h.b16 %v1935_v34 }
 0x300   :  { %v1623_v42 = vpop.f32.mrf.mxu1 }
 0x301   :  { %2447 = vst [vmem:[#allocation14 + $0x8] sm:$0xf] %v2415_v21  ;;  %v2037_v33 = vpack.c.b16 %v2015_v49, %v2014_v31  ;;  %v1624_v18 = vadd.f32 %v1623_v42, %v1534_v16  ;;  %v3649_v4 = vpack.c.b16 %v2232_v28, %v2231_v5  ;;  %v1828_v35 = vadd.f32 %v3498_v62, %v1092_v48  ;;  %v1544_v14 = vpop.f32.mrf.mxu0 }
 0x303   :  { %2161 = vmatmul.bf16.gmra.mxu2 %v2037_v33  ;;  %v1831_v52 = vadd.f32 %v3500_v2, %v1624_v18  ;;  %v1892_v8 = vmax.f32 %v1828_v35, 0.0 }
 0x305   :  { %v1895_v37 = vmax.f32 %v1831_v52, 0.0  ;;  %v1936_v20 = vpack.c.bf16 %v1893_v17, %v1892_v8 }
 0x306   :  { %v1093_v29 = vpop.f32.mrf.mxu3  ;;  %v2122_v41 = vpop.f32.mrf.mxu2 }
 0x307   :  { %v1094_v0 = vadd.f32 %v1093_v29, %v3547_v11  ;;  %v2416_v13 = vpack.c.bf16 %v2122_v41, %v2122_v41  ;;  %v2016_v53 = vunpack.c.l.b16 %v1936_v20  ;;  %v2233_v26 = vunpack.c.h.b16 %v1936_v20 }
 0x308   :  { %v1626_v47 = vpop.f32.mrf.mxu1 }
 0x309   :  { %v1830_v16 = vadd.f32 %v3498_v62, %v1094_v0  ;;  %2448 = vst [vmem:[#allocation14 + $0x10] sm:$0xf] %v2416_v13  ;;  %v1627_v57 = vadd.f32 %v1626_v47, %v1537_v63  ;;  %v1547_v42 = vpop.f32.mrf.mxu0 }
 0x30b   :  { %v1894_v45 = vmax.f32 %v1830_v16, 0.0  ;;  %2348 = vmatmul.bf16.gmra.mxu3 %v3573_v51  ;;  %v1833_v34 = vadd.f32 %v3500_v2, %v1627_v57 }
 0x30d   :  { %v1937_v19 = vpack.c.bf16 %v1895_v37, %v1894_v45 }
 0x30e   :  { %v1096_v50 = vpop.f32.mrf.mxu3  ;;  %v2124_v56 = vpop.f32.mrf.mxu2 }
 0x30f   :  { %v1097_v43 = vadd.f32 %v1096_v50, %v3557_v36  ;;  %v2417_v11 = vpack.c.bf16 %v2124_v56, %v2124_v56  ;;  %v2017_v27 = vunpack.c.l.b16 %v1937_v19  ;;  %v2234_v32 = vunpack.c.h.b16 %v1937_v19 }
 0x310   :  { %v1628_v9 = vpop.f32.mrf.mxu1  ;;  %v1897_v36 = vmax.f32 %v1833_v34, 0.0 }
 0x311   :  { %2449 = vst [vmem:[#allocation14 + $0x18] sm:$0xf] %v2417_v11  ;;  %v2038_v3 = vpack.c.b16 %v2017_v27, %v2016_v53  ;;  %v1629_v60 = vadd.f32 %v1628_v9, %v1539_v46  ;;  %v3658_v25 = vpack.c.b16 %v2234_v32, %v2233_v26  ;;  %v1832_v51 = vadd.f32 %v3498_v62, %v1097_v43  ;;  %v1549_v20 = vpop.f32.mrf.mxu0 }
 0x313   :  { %2166 = vmatmul.bf16.gmra.mxu2 %v2038_v3  ;;  %v1835_v63 = vadd.f32 %v3500_v2, %v1629_v60  ;;  %v1896_v55 = vmax.f32 %v1832_v51, 0.0 }
 0x315   :  { %v1899_v21 = vmax.f32 %v1835_v63, 0.0  ;;  %v1938_v49 = vpack.c.bf16 %v1897_v36, %v1896_v55 }
 0x316   :  { %v1098_v61 = vpop.f32.mrf.mxu3  ;;  %v2127_v12 = vpop.f32.mrf.mxu2 }
 0x317   :  { %v1099_v31 = vadd.f32 %v1098_v61, %v3566_v6  ;;  %v2418_v5 = vpack.c.bf16 %v2127_v12, %v2127_v12  ;;  %v2018_v52 = vunpack.c.l.b16 %v1938_v49  ;;  %v2235_v8 = vunpack.c.h.b16 %v1938_v49 }
 0x318   :  { %v1631_v48 = vpop.f32.mrf.mxu1 }
 0x319   :  { %v1834_v46 = vadd.f32 %v3498_v62, %v1099_v31  ;;  %2450 = vst [vmem:[#allocation14 + $0x20] sm:$0xf] %v2418_v5  ;;  %v1632_v35 = vadd.f32 %v1631_v48, %v1542_v15  ;;  %v1552_v61 = vpop.f32.mrf.mxu0 }
 0x31b   :  { %v1898_v28 = vmax.f32 %v1834_v46, 0.0  ;;  %2353 = vmatmul.bf16.gmra.mxu3 %v3591_v24  ;;  %v1837_v37 = vadd.f32 %v3500_v2, %v1632_v35 }
 0x31d   :  { %v1939_v33 = vpack.c.bf16 %v1899_v21, %v1898_v28 }
 0x31e   :  { %v1101_v18 = vpop.f32.mrf.mxu3  ;;  %v2129_v40 = vpop.f32.mrf.mxu2 }
 0x31f   :  { %v1102_v29 = vadd.f32 %v1101_v18, %v3578_v38  ;;  %v2419_v6 = vpack.c.bf16 %v2129_v40, %v2129_v40  ;;  %v2019_v17 = vunpack.c.l.b16 %v1939_v33  ;;  %v2236_v41 = vunpack.c.h.b16 %v1939_v33 }
 0x320   :  { %v1633_v0 = vpop.f32.mrf.mxu1  ;;  %v1901_v38 = vmax.f32 %v1837_v37, 0.0 }
 0x321   :  { %2451 = vst [vmem:[#allocation14 + $0x28] sm:$0xf] %v2419_v6  ;;  %v2039_v13 = vpack.c.b16 %v2019_v17, %v2018_v52  ;;  %v1634_v47 = vadd.f32 %v1633_v0, %v1544_v14  ;;  %v3667_v16 = vpack.c.b16 %v2236_v41, %v2235_v8  ;;  %v1836_v24 = vadd.f32 %v3498_v62, %v1102_v29  ;;  %v1554_v52 = vpop.f32.mrf.mxu0 }
 0x323   :  { %2171 = vmatmul.bf16.gmra.mxu2 %v2039_v13  ;;  %v1839_v15 = vadd.f32 %v3500_v2, %v1634_v47  ;;  %v1900_v45 = vmax.f32 %v1836_v24, 0.0 }
 0x325   :  { %v1903_v43 = vmax.f32 %v1839_v15, 0.0  ;;  %v1940_v11 = vpack.c.bf16 %v1901_v38, %v1900_v45 }
 0x326   :  { %v1103_v19 = vpop.f32.mrf.mxu3  ;;  %v2132_v50 = vpop.f32.mrf.mxu2 }
 0x327   :  { %v1104_v57 = vadd.f32 %v1103_v19, %v3588_v23  ;;  %v2420_v56 = vpack.c.bf16 %v2132_v50, %v2132_v50  ;;  %v2020_v14 = vunpack.c.l.b16 %v1940_v11  ;;  %v2237_v51 = vunpack.c.h.b16 %v1940_v11 }
 0x328   :  { %v1636_v53 = vpop.f32.mrf.mxu1 }
 0x329   :  { %v1838_v26 = vadd.f32 %v3498_v62, %v1104_v57  ;;  %2452 = vst [vmem:[#allocation14 + $0x30] sm:$0xf] %v2420_v56  ;;  %v1637_v3 = vadd.f32 %v1636_v53, %v1547_v42  ;;  %v1557_v57 = vpop.f32.mrf.mxu0 }
 0x32b   :  { %v1902_v27 = vmax.f32 %v1838_v26, 0.0  ;;  %2358 = vmatmul.bf16.gmra.mxu3 %v3603_v59  ;;  %v1841_v48 = vadd.f32 %v3500_v2, %v1637_v3 }
 0x32d   :  { %v1941_v32 = vpack.c.bf16 %v1903_v43, %v1902_v27 }
 0x32e   :  { %v1106_v9 = vpop.f32.mrf.mxu3  ;;  %v2134_v60 = vpop.f32.mrf.mxu2 }
 0x32f   :  { %v1107_v34 = vadd.f32 %v1106_v9, %v3598_v54  ;;  %v2421_v63 = vpack.c.bf16 %v2134_v60, %v2134_v60  ;;  %v2021_v23 = vunpack.c.l.b16 %v1941_v32  ;;  %v2238_v55 = vunpack.c.h.b16 %v1941_v32 }
 0x330   :  { %v1638_v36 = vpop.f32.mrf.mxu1  ;;  %v1905_v54 = vmax.f32 %v1841_v48, 0.0 }
 0x331   :  { %2453 = vst [vmem:[#allocation14 + $0x38] sm:$0xf] %v2421_v63  ;;  %v2040_v12 = vpack.c.b16 %v2021_v23, %v2020_v14  ;;  %v1639_v31 = vadd.f32 %v1638_v36, %v1549_v20  ;;  %v3676_v5 = vpack.c.b16 %v2238_v55, %v2237_v51  ;;  %v1840_v59 = vadd.f32 %v3498_v62, %v1107_v34  ;;  %v1559_v34 = vpop.f32.mrf.mxu0 }
 0x333   :  { %2176 = vmatmul.bf16.gmra.mxu2 %v2040_v12  ;;  %v1843_v46 = vadd.f32 %v3500_v2, %v1639_v31  ;;  %v1904_v21 = vmax.f32 %v1840_v59, 0.0 }
 0x335   :  { %v1907_v40 = vmax.f32 %v1843_v46, 0.0  ;;  %v1942_v8 = vpack.c.bf16 %v1905_v54, %v1904_v21 }
 0x336   :  { %v1108_v49 = vpop.f32.mrf.mxu3  ;;  %v2137_v28 = vpop.f32.mrf.mxu2 }
 0x337   :  { %v1109_v42 = vadd.f32 %v1108_v49, %v3607_v30  ;;  %v2422_v33 = vpack.c.bf16 %v2137_v28, %v2137_v28  ;;  %v2022_v13 = vunpack.c.l.b16 %v1942_v8  ;;  %v2239_v47 = vunpack.c.h.b16 %v1942_v8 }
 0x338   :  { %v1641_v18 = vpop.f32.mrf.mxu1 }
 0x339   :  { %v1842_v35 = vadd.f32 %v3498_v62, %v1109_v42  ;;  %2454 = vst [vmem:[#allocation14 + $0x40] sm:$0xf] %v2422_v33  ;;  %v1642_v41 = vadd.f32 %v1641_v18, %v1552_v61 }
 0x33b   :  { %v1906_v29 = vmax.f32 %v1842_v35, 0.0  ;;  %2363 = vmatmul.bf16.gmra.mxu3 %v3616_v10  ;;  %v1845_v10 = vadd.f32 %v3500_v2, %v1642_v41 }
 0x33d   :  { %v1943_v6 = vpack.c.bf16 %v1907_v40, %v1906_v29 }
 0x33e   :  { %v1111_v17 = vpop.f32.mrf.mxu3  ;;  %v2139_v0 = vpop.f32.mrf.mxu2 }
 0x33f   :  { %v1112_v24 = vadd.f32 %v1111_v17, %v3613_v7  ;;  %v2423_v30 = vpack.c.bf16 %v2139_v0, %v2139_v0  ;;  %v2023_v37 = vunpack.c.l.b16 %v1943_v6  ;;  %v2240_v15 = vunpack.c.h.b16 %v1943_v6 }
 0x340   :  { %v1643_v20 = vpop.f32.mrf.mxu1  ;;  %v1909_v7 = vmax.f32 %v1845_v10, 0.0 }
 0x341   :  { %2455 = vst [vmem:[#allocation14 + $0x48] sm:$0xf] %v2423_v30  ;;  %v2041_v45 = vpack.c.b16 %v2023_v37, %v2022_v13  ;;  %v1644_v19 = vadd.f32 %v1643_v20, %v1554_v52  ;;  %v3685_v38 = vpack.c.b16 %v2240_v15, %v2239_v47  ;;  %v1844_v50 = vadd.f32 %v3498_v62, %v1112_v24 }
 0x343   :  { %2181 = vmatmul.bf16.gmra.mxu2 %v2041_v45  ;;  %v1847_v56 = vadd.f32 %v3500_v2, %v1644_v19  ;;  %v1908_v53 = vmax.f32 %v1844_v50, 0.0 }
 0x345   :  { %v1911_v3 = vmax.f32 %v1847_v56, 0.0  ;;  %v1944_v60 = vpack.c.bf16 %v1909_v7, %v1908_v53 }
 0x346   :  { %v1113_v26 = vpop.f32.mrf.mxu3  ;;  %v2142_v43 = vpop.f32.mrf.mxu2 }
 0x347   :  { %v1114_v11 = vadd.f32 %v1113_v26, %v3622_v39  ;;  %v2424_v27 = vpack.c.bf16 %v2142_v43, %v2142_v43  ;;  %v2024_v61 = vunpack.c.l.b16 %v1944_v60  ;;  %v2241_v36 = vunpack.c.h.b16 %v1944_v60 }
 0x348   :  { %v1646_v32 = vpop.f32.mrf.mxu1 }
 0x349   :  { %v1846_v9 = vadd.f32 %v3498_v62, %v1114_v11  ;;  %2456 = vst [vmem:[#allocation14 + $0x50] sm:$0xf] %v2424_v27  ;;  %v1647_v23 = vadd.f32 %v1646_v32, %v1557_v57 }
 0x34b   :  { %v1910_v14 = vmax.f32 %v1846_v9, 0.0  ;;  %2368 = vmatmul.bf16.gmra.mxu3 %v3627_v44  ;;  %v1849_v54 = vadd.f32 %v3500_v2, %v1647_v23 }
 0x34d   :  { %v1945_v51 = vpack.c.bf16 %v1911_v3, %v1910_v14  ;;  %v1913_v18 = vmax.f32 %v1849_v54, 0.0 }
 0x34e   :  { %v1116_v63 = vpop.f32.mrf.mxu3  ;;  %v2144_v55 = vpop.f32.mrf.mxu2 }
 0x34f   :  { %v1117_v12 = vadd.f32 %v1116_v63, %v3631_v58  ;;  %v2425_v39 = vpack.c.bf16 %v2144_v55, %v2144_v55  ;;  %v2025_v31 = vunpack.c.l.b16 %v1945_v51  ;;  %v2242_v59 = vunpack.c.h.b16 %v1945_v51 }
 0x350   :  { %v1648_v48 = vpop.f32.mrf.mxu1 }
 0x351   :  { %2457 = vst [vmem:[#allocation14 + $0x58] sm:$0xf] %v2425_v39  ;;  %v2042_v46 = vpack.c.b16 %v2025_v31, %v2024_v61  ;;  %v1649_v21 = vadd.f32 %v1648_v48, %v1559_v34  ;;  %v3694_v49 = vpack.c.b16 %v2242_v59, %v2241_v36  ;;  %v1848_v44 = vadd.f32 %v3498_v62, %v1117_v12 }
 0x353   :  { %2186 = vmatmul.bf16.gmra.mxu2 %v2042_v46  ;;  %v1851_v28 = vadd.f32 %v3500_v2, %v1649_v21  ;;  %v1912_v42 = vmax.f32 %v1848_v44, 0.0 }
 0x355   :  { %v1915_v8 = vmax.f32 %v1851_v28, 0.0  ;;  %v1946_v29 = vpack.c.bf16 %v1913_v18, %v1912_v42 }
 0x356   :  { %v1118_v33 = vpop.f32.mrf.mxu3  ;;  %v2147_v58 = vpop.f32.mrf.mxu2 }
 0x357   :  { %v1119_v35 = vadd.f32 %v1118_v33, %v3637_v1  ;;  %v2426_v40 = vpack.c.bf16 %v2147_v58, %v2147_v58  ;;  %v2026_v13 = vunpack.c.l.b16 %v1946_v29  ;;  %v2243_v2 = vunpack.c.h.b16 %v1946_v29 }
 0x359   :  { %v1850_v52 = vadd.f32 %v3498_v62, %v1119_v35  ;;  %2458 = vst [vmem:[#allocation14 + $0x60] sm:$0xf] %v2426_v40 }
 0x35b   :  { %v1914_v6 = vmax.f32 %v1850_v52, 0.0  ;;  %2373 = vmatmul.bf16.gmra.mxu3 %v3640_v22 }
 0x35d   :  { %v1947_v17 = vpack.c.bf16 %v1915_v8, %v1914_v6 }
 0x35e   :  { %v2334_v41 = vpop.f32.mrf.mxu3  ;;  %v2149_v0 = vpop.f32.mrf.mxu2 }
 0x35f   :  { %v2478_v47 = vpack.c.bf16 %v2334_v41, %v2334_v41  ;;  %v2427_v24 = vpack.c.bf16 %v2149_v0, %v2149_v0  ;;  %v2027_v30 = vunpack.c.l.b16 %v1947_v17  ;;  %v2244_v37 = vunpack.c.h.b16 %v1947_v17 }
 0x361   :  { %2510 = vst [vmem:[#allocation14 + $0x4] sm:$0xf] %v2478_v47  ;;  %v2043_v1 = vpack.c.b16 %v2027_v30, %v2026_v13  ;;  %v3702_v15 = vpack.c.b16 %v2244_v37, %v2243_v2 }
 0x362   :  { %2459 = vst [vmem:[#allocation14 + $0x68] sm:$0xf] %v2427_v24 }
 0x363   :  { %2191 = vmatmul.bf16.gmra.mxu2 %v2043_v1 }
 0x366   :  { %v2336_v62 = vpop.f32.mrf.mxu3  ;;  %v2152_v20 = vpop.f32.mrf.mxu2 }
 0x367   :  { %v2479_v45 = vpack.c.bf16 %v2336_v62, %v2336_v62  ;;  %v2428_v19 = vpack.c.bf16 %v2152_v20, %v2152_v20 }
 0x369   :  { %2511 = vst [vmem:[#allocation14 + $0xc] sm:$0xf] %v2479_v45 }
 0x36a   :  { %2460 = vst [vmem:[#allocation14 + $0x70] sm:$0xf] %v2428_v19 }
 0x36b   :  { %2378 = vmatmul.bf16.gmra.mxu3 %v3649_v4 }
 0x36e   :  { %v2339_v22 = vpop.f32.mrf.mxu3  ;;  %v2154_v50 = vpop.f32.mrf.mxu2 }
 0x36f   :  { %v2480_v10 = vpack.c.bf16 %v2339_v22, %v2339_v22  ;;  %v2429_v57 = vpack.c.bf16 %v2154_v50, %v2154_v50 }
 0x371   :  { %2512 = vst [vmem:[#allocation14 + $0x14] sm:$0xf] %v2480_v10 }
 0x372   :  { %2461 = vst [vmem:[#allocation14 + $0x78] sm:$0xf] %v2429_v57 }
 0x376   :  { %v2341_v56 = vpop.f32.mrf.mxu3  ;;  %v2157_v53 = vpop.f32.mrf.mxu2 }
 0x377   :  { %v2481_v26 = vpack.c.bf16 %v2341_v56, %v2341_v56  ;;  %v2430_v7 = vpack.c.bf16 %v2157_v53, %v2157_v53 }
 0x379   :  { %2513 = vst [vmem:[#allocation14 + $0x1c] sm:$0xf] %v2481_v26 }
 0x37a   :  { %2462 = vst [vmem:[#allocation14 + $0x80] sm:$0xf] %v2430_v7 }
 0x37b   :  { %2383 = vmatmul.bf16.gmra.mxu3 %v3658_v25 }
 0x37e   :  { %v2344_v43 = vpop.f32.mrf.mxu3  ;;  %v2159_v11 = vpop.f32.mrf.mxu2 }
 0x37f   :  { %v2482_v27 = vpack.c.bf16 %v2344_v43, %v2344_v43  ;;  %v2431_v32 = vpack.c.bf16 %v2159_v11, %v2159_v11 }
 0x381   :  { %2514 = vst [vmem:[#allocation14 + $0x24] sm:$0xf] %v2482_v27 }
 0x382   :  { %2463 = vst [vmem:[#allocation14 + $0x88] sm:$0xf] %v2431_v32 }
 0x386   :  { %v2346_v4 = vpop.f32.mrf.mxu3  ;;  %v2162_v9 = vpop.f32.mrf.mxu2 }
 0x387   :  { %v2483_v3 = vpack.c.bf16 %v2346_v4, %v2346_v4  ;;  %v2432_v60 = vpack.c.bf16 %v2162_v9, %v2162_v9 }
 0x389   :  { %2515 = vst [vmem:[#allocation14 + $0x2c] sm:$0xf] %v2483_v3 }
 0x38a   :  { %2464 = vst [vmem:[#allocation14 + $0x90] sm:$0xf] %v2432_v60 }
 0x38b   :  { %2388 = vmatmul.bf16.gmra.mxu3 %v3667_v16 }
 0x38e   :  { %v2349_v14 = vpop.f32.mrf.mxu3  ;;  %v2164_v51 = vpop.f32.mrf.mxu2 }
 0x38f   :  { %v2484_v34 = vpack.c.bf16 %v2349_v14, %v2349_v14  ;;  %v2433_v63 = vpack.c.bf16 %v2164_v51, %v2164_v51 }
 0x391   :  { %2516 = vst [vmem:[#allocation14 + $0x34] sm:$0xf] %v2484_v34 }
 0x392   :  { %2465 = vst [vmem:[#allocation14 + $0x98] sm:$0xf] %v2433_v63 }
 0x396   :  { %v2351_v25 = vpop.f32.mrf.mxu3  ;;  %v2167_v23 = vpop.f32.mrf.mxu2 }
 0x397   :  { %v2485_v55 = vpack.c.bf16 %v2351_v25, %v2351_v25  ;;  %v2434_v61 = vpack.c.bf16 %v2167_v23, %v2167_v23 }
 0x399   :  { %2517 = vst [vmem:[#allocation14 + $0x3c] sm:$0xf] %v2485_v55 }
 0x39a   :  { %2466 = vst [vmem:[#allocation14 + $0xa0] sm:$0xf] %v2434_v61 }
 0x39b   :  { %2393 = vmatmul.bf16.gmra.mxu3 %v3676_v5 }
 0x39e   :  { %v2354_v36 = vpop.f32.mrf.mxu3  ;;  %v2169_v12 = vpop.f32.mrf.mxu2 }
 0x39f   :  { %v2486_v39 = vpack.c.bf16 %v2354_v36, %v2354_v36  ;;  %v2435_v31 = vpack.c.bf16 %v2169_v12, %v2169_v12 }
 0x3a1   :  { %2518 = vst [vmem:[#allocation14 + $0x44] sm:$0xf] %v2486_v39 }
 0x3a2   :  { %2467 = vst [vmem:[#allocation14 + $0xa8] sm:$0xf] %v2435_v31 }
 0x3a6   :  { %v2356_v16 = vpop.f32.mrf.mxu3  ;;  %v2172_v59 = vpop.f32.mrf.mxu2 }
 0x3a7   :  { %v2487_v48 = vpack.c.bf16 %v2356_v16, %v2356_v16  ;;  %v2436_v46 = vpack.c.bf16 %v2172_v59, %v2172_v59 }
 0x3a9   :  { %2519 = vst [vmem:[#allocation14 + $0x4c] sm:$0xf] %v2487_v48 }
 0x3aa   :  { %2468 = vst [vmem:[#allocation14 + $0xb0] sm:$0xf] %v2436_v46 }
 0x3ab   :  { %2398 = vmatmul.bf16.gmra.mxu3 %v3685_v38 }
 0x3ae   :  { %v2359_v21 = vpop.f32.mrf.mxu3  ;;  %v2174_v44 = vpop.f32.mrf.mxu2 }
 0x3af   :  { %v2488_v54 = vpack.c.bf16 %v2359_v21, %v2359_v21  ;;  %v2437_v28 = vpack.c.bf16 %v2174_v44, %v2174_v44 }
 0x3b1   :  { %2520 = vst [vmem:[#allocation14 + $0x54] sm:$0xf] %v2488_v54 }
 0x3b2   :  { %2469 = vst [vmem:[#allocation14 + $0xb8] sm:$0xf] %v2437_v28 }
 0x3b6   :  { %v2361_v5 = vpop.f32.mrf.mxu3  ;;  %v2177_v42 = vpop.f32.mrf.mxu2 }
 0x3b7   :  { %v2489_v33 = vpack.c.bf16 %v2361_v5, %v2361_v5  ;;  %v2438_v18 = vpack.c.bf16 %v2177_v42, %v2177_v42 }
 0x3b9   :  { %2521 = vst [vmem:[#allocation14 + $0x5c] sm:$0xf] %v2489_v33 }
 0x3ba   :  { %2470 = vst [vmem:[#allocation14 + $0xc0] sm:$0xf] %v2438_v18 }
 0x3bb   :  { %2403 = vmatmul.bf16.gmra.mxu3 %v3694_v49 }
 0x3be   :  { %v2364_v58 = vpop.f32.mrf.mxu3  ;;  %v2179_v35 = vpop.f32.mrf.mxu2 }
 0x3bf   :  { %v2490_v40 = vpack.c.bf16 %v2364_v58, %v2364_v58  ;;  %v2439_v52 = vpack.c.bf16 %v2179_v35, %v2179_v35 }
 0x3c1   :  { %2522 = vst [vmem:[#allocation14 + $0x64] sm:$0xf] %v2490_v40 }
 0x3c2   :  { %2471 = vst [vmem:[#allocation14 + $0xc8] sm:$0xf] %v2439_v52 }
 0x3c6   :  { %v2366_v38 = vpop.f32.mrf.mxu3  ;;  %v2182_v8 = vpop.f32.mrf.mxu2 }
 0x3c7   :  { %v2491_v29 = vpack.c.bf16 %v2366_v38, %v2366_v38  ;;  %v2440_v6 = vpack.c.bf16 %v2182_v8, %v2182_v8 }
 0x3c9   :  { %2523 = vst [vmem:[#allocation14 + $0x6c] sm:$0xf] %v2491_v29 }
 0x3ca   :  { %2472 = vst [vmem:[#allocation14 + $0xd0] sm:$0xf] %v2440_v6 }
 0x3cb   :  { %2408 = vmatmul.bf16.gmra.mxu3 %v3702_v15 }
 0x3ce   :  { %v2369_v17 = vpop.f32.mrf.mxu3  ;;  %v2184_v41 = vpop.f32.mrf.mxu2 }
 0x3cf   :  { %v2492_v0 = vpack.c.bf16 %v2369_v17, %v2369_v17  ;;  %v2441_v13 = vpack.c.bf16 %v2184_v41, %v2184_v41 }
 0x3d1   :  { %2524 = vst [vmem:[#allocation14 + $0x74] sm:$0xf] %v2492_v0 }
 0x3d2   :  { %2473 = vst [vmem:[#allocation14 + $0xd8] sm:$0xf] %v2441_v13 }
 0x3d6   :  { %v2371_v49 = vpop.f32.mrf.mxu3  ;;  %v2187_v2 = vpop.f32.mrf.mxu2 }
 0x3d7   :  { %v2493_v47 = vpack.c.bf16 %v2371_v49, %v2371_v49  ;;  %v2442_v24 = vpack.c.bf16 %v2187_v2, %v2187_v2 }
 0x3d9   :  { %2525 = vst [vmem:[#allocation14 + $0x7c] sm:$0xf] %v2493_v47 }
 0x3da   :  { %2474 = vst [vmem:[#allocation14 + $0xe0] sm:$0xf] %v2442_v24 }
 0x3de   :  { %v2374_v30 = vpop.f32.mrf.mxu3  ;;  %v2189_v37 = vpop.f32.mrf.mxu2 }
 0x3df   :  { %v2494_v1 = vpack.c.bf16 %v2374_v30, %v2374_v30  ;;  %v2443_v62 = vpack.c.bf16 %v2189_v37, %v2189_v37 }
 0x3e1   :  { %2526 = vst [vmem:[#allocation14 + $0x84] sm:$0xf] %v2494_v1 }
 0x3e2   :  { %2475 = vst [vmem:[#allocation14 + $0xe8] sm:$0xf] %v2443_v62 }
 0x3e6   :  { %v2376_v20 = vpop.f32.mrf.mxu3  ;;  %v2192_v15 = vpop.f32.mrf.mxu2 }
 0x3e7   :  { %v2495_v45 = vpack.c.bf16 %v2376_v20, %v2376_v20  ;;  %v2444_v19 = vpack.c.bf16 %v2192_v15, %v2192_v15 }
 0x3e9   :  { %2527 = vst [vmem:[#allocation14 + $0x8c] sm:$0xf] %v2495_v45 }
 0x3ea   :  { %2476 = vst [vmem:[#allocation14 + $0xf0] sm:$0xf] %v2444_v19 }
 0x3ee   :  { %v2379_v22 = vpop.f32.mrf.mxu3  ;;  %v2194_v50 = vpop.f32.mrf.mxu2 }
 0x3ef   :  { %v2496_v10 = vpack.c.bf16 %v2379_v22, %v2379_v22  ;;  %v2445_v57 = vpack.c.bf16 %v2194_v50, %v2194_v50 }
 0x3f1   :  { %2528 = vst [vmem:[#allocation14 + $0x94] sm:$0xf] %v2496_v10 }
 0x3f2   :  { %2477 = vst [vmem:[#allocation14 + $0xf8] sm:$0xf] %v2445_v57 }
 0x3f6   :  { %v2381_v56 = vpop.f32.mrf.mxu3 }
 0x3f7   :  { %v2497_v53 = vpack.c.bf16 %v2381_v56, %v2381_v56 }
 0x3f9   :  { %2529 = vst [vmem:[#allocation14 + $0x9c] sm:$0xf] %v2497_v53 }
 0x3fe   :  { %v2384_v26 = vpop.f32.mrf.mxu3 }
 0x3ff   :  { %v2498_v7 = vpack.c.bf16 %v2384_v26, %v2384_v26 }
 0x401   :  { %2530 = vst [vmem:[#allocation14 + $0xa4] sm:$0xf] %v2498_v7 }
 0x406   :  { %v2386_v43 = vpop.f32.mrf.mxu3 }
 0x407   :  { %v2499_v11 = vpack.c.bf16 %v2386_v43, %v2386_v43 }
 0x409   :  { %2531 = vst [vmem:[#allocation14 + $0xac] sm:$0xf] %v2499_v11 }
 0x40e   :  { %v2389_v27 = vpop.f32.mrf.mxu3 }
 0x40f   :  { %v2500_v32 = vpack.c.bf16 %v2389_v27, %v2389_v27 }
 0x411   :  { %2532 = vst [vmem:[#allocation14 + $0xb4] sm:$0xf] %v2500_v32 }
 0x416   :  { %v2391_v4 = vpop.f32.mrf.mxu3 }
 0x417   :  { %v2501_v9 = vpack.c.bf16 %v2391_v4, %v2391_v4 }
 0x419   :  { %2533 = vst [vmem:[#allocation14 + $0xbc] sm:$0xf] %v2501_v9 }
 0x41e   :  { %v2394_v3 = vpop.f32.mrf.mxu3 }
 0x41f   :  { %v2502_v60 = vpack.c.bf16 %v2394_v3, %v2394_v3 }
 0x421   :  { %2534 = vst [vmem:[#allocation14 + $0xc4] sm:$0xf] %v2502_v60 }
 0x426   :  { %v2396_v14 = vpop.f32.mrf.mxu3 }
 0x427   :  { %v2503_v51 = vpack.c.bf16 %v2396_v14, %v2396_v14 }
 0x429   :  { %2535 = vst [vmem:[#allocation14 + $0xcc] sm:$0xf] %v2503_v51 }
 0x42e   :  { %v2399_v34 = vpop.f32.mrf.mxu3 }
 0x42f   :  { %v2504_v63 = vpack.c.bf16 %v2399_v34, %v2399_v34 }
 0x431   :  { %2536 = vst [vmem:[#allocation14 + $0xd4] sm:$0xf] %v2504_v63 }
 0x436   :  { %v2401_v25 = vpop.f32.mrf.mxu3 }
 0x437   :  { %v2505_v23 = vpack.c.bf16 %v2401_v25, %v2401_v25 }
 0x439   :  { %2537 = vst [vmem:[#allocation14 + $0xdc] sm:$0xf] %v2505_v23 }
 0x43e   :  { %v2404_v55 = vpop.f32.mrf.mxu3 }
 0x43f   :  { %v2506_v61 = vpack.c.bf16 %v2404_v55, %v2404_v55 }
 0x441   :  { %2538 = vst [vmem:[#allocation14 + $0xe4] sm:$0xf] %v2506_v61 }
 0x446   :  { %v2406_v36 = vpop.f32.mrf.mxu3 }
 0x447   :  { %v2507_v12 = vpack.c.bf16 %v2406_v36, %v2406_v36 }
 0x449   :  { %2539 = vst [vmem:[#allocation14 + $0xec] sm:$0xf] %v2507_v12 }
 0x44e   :  { %v2409_v39 = vpop.f32.mrf.mxu3 }
 0x44f   :  { %v2508_v31 = vpack.c.bf16 %v2409_v39, %v2409_v39 }
 0x451   :  { %2540 = vst [vmem:[#allocation14 + $0xf4] sm:$0xf] %v2508_v31 }
 0x456   :  { %v2411_v16 = vpop.f32.mrf.mxu3 }
 0x457   :  { %v2509_v59 = vpack.c.bf16 %v2411_v16, %v2411_v16 }
 0x459   :  { %2541 = vst [vmem:[#allocation14 + $0xfc] sm:$0xf] %v2509_v59 }
 0x45a   :  { %2554 = dma.vmem_to_hbm [thread:$0]  %s2547_s8, 4096, %s2549_s13, [#allocation5], %s3314_s9, %s3314_s9, %s3315_s10  }
 0x45b   :  { %3311 = dma.done.wait [#allocation5], 4096  }
 0x45c   :  { %3312 = vsyncadd [#allocation5], 4294963200 }
 0x45d   :  { %2559 = vsyncpa [#allocation4], 1 }
 0x45e   :  { %2560 = vsyncpa [#allocation7], 1 }
 0x45f   :  { %2561 = vsyncpa [#allocation10], 1 }
 0x460   :  { %2562 = vsyncpa [#allocation13], 1 }
 0x461   :  { %2563 = vsyncpa [#allocation5], 1 }

</bundles_post_ra>
